<compile_context>
chip_gen: v5e
topology: v5e:2x2
jax: 0.10.0
libtpu: 0.0.40
codegen_flags: <defaults>
</compile_context>

<pallas_src>
import functools

import jax
import jax.numpy as jnp
from jax import lax
from jax.experimental import pallas as pl
from jax.experimental.pallas import tpu as pltpu


def _round_up(x, m):
    return (x + m - 1) // m * m


def _vmem_capacity_bytes():
    """Per-core VMEM capacity; conservative 64 MiB fallback (v7x floor)."""
    try:
        cap = int(getattr(pltpu.get_tpu_info(), "vmem_capacity_bytes", 0))
        if cap > 0:
            return cap
    except Exception:
        pass
    return 64 * 1024 * 1024


def _conv_sum_kernel(w_ref, x_ref, xh_ref, b_ref, o_ref, *,
                     offsets, cout, cout_p, tm):
    """One (Cout, tm) output tile of the fused dilated-conv sum.

    w_ref : (T*cout_p, Cin)  tap-stacked folded weights, VMEM resident
    x_ref : (Cin, tm)        main slab of the flattened padded input
    xh_ref: (Cin, halo_blk)  halo slab (the next halo_blk columns)
    b_ref : (Cout, 1)        branch-summed bias (f32), VMEM resident
    o_ref : (Cout, tm)       transposed output tile (lane-dense stores)
    """
    w = w_ref[...]
    # Per-tap partial outputs for every column of the halo'd slab: row block t
    # of `y` holds W_t @ x.  Two dots (main + halo) share the resident lhs.
    y = jnp.concatenate(
        [jnp.dot(w, x_ref[...], preferred_element_type=jnp.float32),
         jnp.dot(w, xh_ref[...], preferred_element_type=jnp.float32)],
        axis=1)                                     # (T*cout_p, tm+halo) f32
    acc = jnp.zeros((cout, tm), jnp.float32)
    for t, off in enumerate(offsets):               # static, unrolled tap loop
        acc = acc + y[t * cout_p:t * cout_p + cout, off:off + tm]
    o_ref[...] = (acc + b_ref[...]).astype(o_ref.dtype)


def _auto_tm(cin, cout_p, n_taps, halo_blk, itemsize, vmem_budget,
             tm_cap=8192):
    """Largest tm (multiple of halo_blk, <= tm_cap) fitting the VMEM budget."""
    cin_r = _round_up(max(cin, 1), max(32 // itemsize, 8))
    cout_r = _round_up(cout_p, 8)
    w_bytes = n_taps * cout_r * max(_round_up(cin, 128), 128) * itemsize
    bias_bytes = cout_r * 128 * 4

    def need(tm):
        x_main = 2 * cin_r * tm * itemsize            # double-buffered main
        x_halo = 2 * cin_r * halo_blk * itemsize      # double-buffered halo
        y = n_taps * cout_r * (tm + halo_blk) * 4     # tap-stacked matmul out
        acc = cout_r * tm * 4
        out = 2 * cout_r * tm * 4                     # double-buffered output
        return w_bytes + bias_bytes + x_main + x_halo + y + acc + out

    tm = max(tm_cap // halo_blk, 1) * halo_blk
    while tm > halo_blk and need(tm) > vmem_budget:
        tm -= halo_blk
    return tm


def classifier_module_forward(x_nchw, weights, biases, dilations, paddings, *,
                              compute_dtype=jnp.bfloat16, tm=None,
                              min_tiles=2):
    """Pallas implementation of Classifier_Module.forward.

    x_nchw:  (N, Cin, H, W) float32
    weights: (B, Cout, Cin, 3, 3)
    biases:  (B, Cout)
    Returns: (N, Cout, H, W) float32
    """
    N, Cin, H, W = x_nchw.shape
    B, Cout = biases.shape
    assert list(dilations) == list(paddings), (
        "Classifier_Module uses padding == dilation so spatial size is preserved")

    dmax = int(max(dilations))
    Hp, Wp = H + 2 * dmax, W + 2 * dmax
    L = N * Hp * Wp                      # flattened padded-plane length

    # ---- Fold the 9*B taps; dedupe identical flat offsets (centre tap across
    # branches, branches sharing a dilation) summing their weights in f32.
    wf = weights.astype(jnp.float32)
    tap_w = {}
    for b, d in enumerate(dilations):
        for ky in range(3):
            for kx in range(3):
                off = (dmax + (ky - 1) * d) * Wp + (dmax + (kx - 1) * d)
                wk = wf[b, :, :, ky, kx]                      # (Cout, Cin)
                tap_w[off] = wk if off not in tap_w else tap_w[off] + wk
    offsets = tuple(sorted(tap_w))
    T = len(offsets)
    cout_p = _round_up(Cout, 8)          # sublane-aligned tap row blocks

    w_stack = jnp.stack(
        [jnp.pad(tap_w[o], ((0, cout_p - Cout), (0, 0))) for o in offsets],
        axis=0).reshape(T * cout_p, Cin).astype(compute_dtype)
    bias_col = jnp.sum(biases.astype(jnp.float32), axis=0).reshape(Cout, 1)

    # ---- Flattened, halo-padded channel-major input (read ~once from HBM).
    x_c = jnp.transpose(x_nchw, (1, 0, 2, 3)).astype(compute_dtype)
    xp = jnp.pad(x_c, ((0, 0), (0, 0), (dmax, dmax), (dmax, dmax)))
    x_flat = xp.reshape(Cin, L)

    max_off = offsets[-1]                # = 2*dmax*(Wp+1)
    halo_blk = max(128, _round_up(max_off, 128))
    itemsize = jnp.dtype(compute_dtype).itemsize

    # ---- Generation-aware tiling.
    vmem_cap = _vmem_capacity_bytes()
    if tm is None:
        tm = _auto_tm(Cin, cout_p, T, halo_blk, itemsize,
                      vmem_budget=min(int(vmem_cap * 0.55), 96 * 1024 * 1024))
        eff_min_tiles = min_tiles        # >=2 steps -> both v7x TCs get work
    else:
        tm = max(halo_blk, _round_up(int(tm), halo_blk))
        eff_min_tiles = 1
    # Rebalance so the grid divides L with minimal dead columns.
    want_tiles = max(pl.cdiv(L, tm), min(eff_min_tiles, pl.cdiv(L, halo_blk)))
    tm = _round_up(pl.cdiv(L, want_tiles), halo_blk)
    num_tiles = pl.cdiv(L, tm)
    width = num_tiles * tm

    x_flat = jnp.pad(x_flat, ((0, 0), (0, width + halo_blk - L)))
    step = tm // halo_blk                # tm is a multiple of halo_blk

    kernel = functools.partial(_conv_sum_kernel, offsets=offsets,
                               cout=Cout, cout_p=cout_p, tm=tm)
    out_t = pl.pallas_call(
        kernel,
        out_shape=jax.ShapeDtypeStruct((Cout, width), jnp.float32),
        grid_spec=pltpu.PrefetchScalarGridSpec(
            num_scalar_prefetch=0,
            grid=(num_tiles,),
            in_specs=[
                pl.BlockSpec((T * cout_p, Cin), lambda i: (0, 0)),   # weights
                pl.BlockSpec((Cin, tm), lambda i: (0, i)),           # main slab
                pl.BlockSpec((Cin, halo_blk),
                             lambda i, s=step: (0, (i + 1) * s)),    # halo slab
                pl.BlockSpec((Cout, 1), lambda i: (0, 0)),           # bias
            ],
            out_specs=pl.BlockSpec((Cout, tm), lambda i: (0, i)),
        ),
        compiler_params=pltpu.CompilerParams(
            dimension_semantics=("parallel",),
            vmem_limit_bytes=min(int(vmem_cap * 0.85), 120 * 1024 * 1024),
        ),
    )(w_stack, x_flat, x_flat, bias_col)

    # Valid outputs live at the top-left (y<H, x<W) of each padded plane.
    out = out_t[:, :L].reshape(Cout, N, Hp, Wp)[:, :, :H, :W]
    return jnp.transpose(out, (1, 0, 2, 3))          # back to NCHW


def _reference_forward(x_nchw, weights, biases, dilations, paddings):
    """Pure-JAX reference using lax.conv_general_dilated (matches PyTorch)."""
    out = None
    for b, (d, p) in enumerate(zip(dilations, paddings)):
        y = lax.conv_general_dilated(
            x_nchw, weights[b],
            window_strides=(1, 1),
            padding=((p, p), (p, p)),
            rhs_dilation=(d, d),
            dimension_numbers=("NCHW", "OIHW", "NCHW"),
        ) + biases[b].reshape(1, -1, 1, 1)
        out = y if out is None else out + y
    return out


if __name__ == "__main__":
    # Classifier_Module(dilation_series=[1,2,4], padding_series=[1,2,4],
    #                   NoLabels=8, input_channel=4)
    dilations = [1, 2, 4]
    paddings = [1, 2, 4]
    NoLabels = 8
    input_channel = 4
    N, H, Wsp = 2, 16, 16

    key = jax.random.PRNGKey(0)
    kx, kw, kb = jax.random.split(key, 3)

    x = jax.random.normal(kx, (N, input_channel, H, Wsp), dtype=jnp.float32)
    # PyTorch init: weight ~ N(0, 0.01); bias ~ Conv2d default (synthetic).
    weights = 0.01 * jax.random.normal(
        kw, (len(dilations), NoLabels, input_channel, 3, 3), dtype=jnp.float32)
    fan_in = input_channel * 9
    bound = 1.0 / jnp.sqrt(fan_in)
    biases = jax.random.uniform(
        kb, (len(dilations), NoLabels), dtype=jnp.float32,
        minval=-bound, maxval=bound)

    ref = _reference_forward(x, weights, biases, dilations, paddings)

    # 1) Default path: bf16 activation/weight stream, auto tiling (>=2 tiles
    #    so both v7x TensorCores get work); looser tolerance for bf16 inputs.
    fwd = jax.jit(functools.partial(
        classifier_module_forward, dilations=dilations, paddings=paddings))
    out = jax.block_until_ready(fwd(x, weights, biases))
    assert out.shape == (N, NoLabels, H, Wsp)
    assert jnp.allclose(out, ref, rtol=5e-2, atol=1e-2), "bf16 mismatch"

    # 2) f32 path, auto tiling -> tight tolerance vs the conv reference.
    fwd_f32 = jax.jit(functools.partial(
        classifier_module_forward, dilations=dilations, paddings=paddings,
        compute_dtype=jnp.float32))
    out_f32 = jax.block_until_ready(fwd_f32(x, weights, biases))
    assert jnp.allclose(out_f32, ref, rtol=1e-4, atol=1e-5), "f32 mismatch"

    # 3) f32 path with a small forced tile -> exercises the multi-step grid,
    #    halo-slab indexing across tiles and tm rounding to the halo block.
    fwd_small = jax.jit(functools.partial(
        classifier_module_forward, dilations=dilations, paddings=paddings,
        compute_dtype=jnp.float32, tm=128))
    out_small = jax.block_until_ready(fwd_small(x, weights, biases))
    assert jnp.allclose(out_small, ref, rtol=1e-4, atol=1e-5), "tiled mismatch"

    print("KERNEL_OK")
</pallas_src>

<mosaic_0001>
module attributes {stable_mosaic.version = 11 : i64} {
  func.func @_conv_sum_kernel(%arg0: i32, %arg1: memref<200x4xbf16, #tpu.memory_space<vmem>>, %arg2: memref<4x768xbf16, #tpu.memory_space<vmem>>, %arg3: memref<4x256xbf16, #tpu.memory_space<vmem>>, %arg4: memref<8x1xf32, #tpu.memory_space<vmem>>, %arg5: memref<8x768xf32, #tpu.memory_space<vmem>>) attributes {dimension_semantics = [#tpu.dimension_semantics<parallel>], iteration_bounds = array<i64: 2>, scalar_prefetch = 0 : i64, scratch_operands = 0 : i64, tpu.core_type = #tpu.core_type<tc>, window_params = [{pipeline_mode = #tpu.pipeline_mode<synchronous>, transform_indices = @transform_0, window_bounds = array<i64: 200, 4>}, {transform_indices = @transform_1, window_bounds = array<i64: 4, 768>}, {transform_indices = @transform_2, window_bounds = array<i64: 4, 256>}, {pipeline_mode = #tpu.pipeline_mode<synchronous>, transform_indices = @transform_3, window_bounds = array<i64: 8, 1>}, {transform_indices = @transform_4, window_bounds = array<i64: 8, 768>}]} {
    %c0 = arith.constant 0 : index
    %c0_0 = arith.constant 0 : index
    %0 = vector.load %arg1[%c0, %c0_0] : memref<200x4xbf16, #tpu.memory_space<vmem>>, vector<200x4xbf16>
    %c0_1 = arith.constant 0 : index
    %c0_2 = arith.constant 0 : index
    %1 = vector.load %arg2[%c0_1, %c0_2] : memref<4x768xbf16, #tpu.memory_space<vmem>>, vector<4x768xbf16>
    %cst = arith.constant dense<0.000000e+00> : vector<200x768xf32>
    %2 = tpu.matmul %0, %1, %cst {dimension_numbers = #tpu.dot_dimension_numbers<[1], [0], [0], [1], [0, 0, 1, 1], [], []>} : vector<200x4xbf16>, vector<4x768xbf16>, vector<200x768xf32> -> vector<200x768xf32>
    %c0_3 = arith.constant 0 : index
    %c0_4 = arith.constant 0 : index
    %3 = vector.load %arg3[%c0_3, %c0_4] : memref<4x256xbf16, #tpu.memory_space<vmem>>, vector<4x256xbf16>
    %cst_5 = arith.constant dense<0.000000e+00> : vector<200x256xf32>
    %4 = tpu.matmul %0, %3, %cst_5 {dimension_numbers = #tpu.dot_dimension_numbers<[1], [0], [0], [1], [0, 0, 1, 1], [], []>} : vector<200x4xbf16>, vector<4x256xbf16>, vector<200x256xf32> -> vector<200x256xf32>
    %5 = tpu.concatenate %2, %4 in 1 : vector<200x768xf32>, vector<200x256xf32> -> vector<200x1024xf32>
    %cst_6 = arith.constant 0.000000e+00 : f32
    %6 = vector.broadcast %cst_6 : f32 to vector<8x768xf32>
    %7 = vector.extract_strided_slice %5 {offsets = [0, 0], sizes = [8, 768], strides = [1, 1]} : vector<200x1024xf32> to vector<8x768xf32>
    %8 = arith.addf %6, %7 : vector<8x768xf32>
    %9 = vector.extract_strided_slice %5 {offsets = [8, 4], sizes = [8, 768], strides = [1, 1]} : vector<200x1024xf32> to vector<8x768xf32>
    %10 = arith.addf %8, %9 : vector<8x768xf32>
    %11 = vector.extract_strided_slice %5 {offsets = [16, 8], sizes = [8, 768], strides = [1, 1]} : vector<200x1024xf32> to vector<8x768xf32>
    %12 = arith.addf %10, %11 : vector<8x768xf32>
    %13 = vector.extract_strided_slice %5 {offsets = [24, 50], sizes = [8, 768], strides = [1, 1]} : vector<200x1024xf32> to vector<8x768xf32>
    %14 = arith.addf %12, %13 : vector<8x768xf32>
    %15 = vector.extract_strided_slice %5 {offsets = [32, 52], sizes = [8, 768], strides = [1, 1]} : vector<200x1024xf32> to vector<8x768xf32>
    %16 = arith.addf %14, %15 : vector<8x768xf32>
    %17 = vector.extract_strided_slice %5 {offsets = [40, 54], sizes = [8, 768], strides = [1, 1]} : vector<200x1024xf32> to vector<8x768xf32>
    %18 = arith.addf %16, %17 : vector<8x768xf32>
    %19 = vector.extract_strided_slice %5 {offsets = [48, 75], sizes = [8, 768], strides = [1, 1]} : vector<200x1024xf32> to vector<8x768xf32>
    %20 = arith.addf %18, %19 : vector<8x768xf32>
    %21 = vector.extract_strided_slice %5 {offsets = [56, 76], sizes = [8, 768], strides = [1, 1]} : vector<200x1024xf32> to vector<8x768xf32>
    %22 = arith.addf %20, %21 : vector<8x768xf32>
    %23 = vector.extract_strided_slice %5 {offsets = [64, 77], sizes = [8, 768], strides = [1, 1]} : vector<200x1024xf32> to vector<8x768xf32>
    %24 = arith.addf %22, %23 : vector<8x768xf32>
    %25 = vector.extract_strided_slice %5 {offsets = [72, 96], sizes = [8, 768], strides = [1, 1]} : vector<200x1024xf32> to vector<8x768xf32>
    %26 = arith.addf %24, %25 : vector<8x768xf32>
    %27 = vector.extract_strided_slice %5 {offsets = [80, 98], sizes = [8, 768], strides = [1, 1]} : vector<200x1024xf32> to vector<8x768xf32>
    %28 = arith.addf %26, %27 : vector<8x768xf32>
    %29 = vector.extract_strided_slice %5 {offsets = [88, 99], sizes = [8, 768], strides = [1, 1]} : vector<200x1024xf32> to vector<8x768xf32>
    %30 = arith.addf %28, %29 : vector<8x768xf32>
    %31 = vector.extract_strided_slice %5 {offsets = [96, 100], sizes = [8, 768], strides = [1, 1]} : vector<200x1024xf32> to vector<8x768xf32>
    %32 = arith.addf %30, %31 : vector<8x768xf32>
    %33 = vector.extract_strided_slice %5 {offsets = [104, 101], sizes = [8, 768], strides = [1, 1]} : vector<200x1024xf32> to vector<8x768xf32>
    %34 = arith.addf %32, %33 : vector<8x768xf32>
    %35 = vector.extract_strided_slice %5 {offsets = [112, 102], sizes = [8, 768], strides = [1, 1]} : vector<200x1024xf32> to vector<8x768xf32>
    %36 = arith.addf %34, %35 : vector<8x768xf32>
    %37 = vector.extract_strided_slice %5 {offsets = [120, 104], sizes = [8, 768], strides = [1, 1]} : vector<200x1024xf32> to vector<8x768xf32>
    %38 = arith.addf %36, %37 : vector<8x768xf32>
    %39 = vector.extract_strided_slice %5 {offsets = [128, 123], sizes = [8, 768], strides = [1, 1]} : vector<200x1024xf32> to vector<8x768xf32>
    %40 = arith.addf %38, %39 : vector<8x768xf32>
    %41 = vector.extract_strided_slice %5 {offsets = [136, 124], sizes = [8, 768], strides = [1, 1]} : vector<200x1024xf32> to vector<8x768xf32>
    %42 = arith.addf %40, %41 : vector<8x768xf32>
    %43 = vector.extract_strided_slice %5 {offsets = [144, 125], sizes = [8, 768], strides = [1, 1]} : vector<200x1024xf32> to vector<8x768xf32>
    %44 = arith.addf %42, %43 : vector<8x768xf32>
    %45 = vector.extract_strided_slice %5 {offsets = [152, 146], sizes = [8, 768], strides = [1, 1]} : vector<200x1024xf32> to vector<8x768xf32>
    %46 = arith.addf %44, %45 : vector<8x768xf32>
    %47 = vector.extract_strided_slice %5 {offsets = [160, 148], sizes = [8, 768], strides = [1, 1]} : vector<200x1024xf32> to vector<8x768xf32>
    %48 = arith.addf %46, %47 : vector<8x768xf32>
    %49 = vector.extract_strided_slice %5 {offsets = [168, 150], sizes = [8, 768], strides = [1, 1]} : vector<200x1024xf32> to vector<8x768xf32>
    %50 = arith.addf %48, %49 : vector<8x768xf32>
    %51 = vector.extract_strided_slice %5 {offsets = [176, 192], sizes = [8, 768], strides = [1, 1]} : vector<200x1024xf32> to vector<8x768xf32>
    %52 = arith.addf %50, %51 : vector<8x768xf32>
    %53 = vector.extract_strided_slice %5 {offsets = [184, 196], sizes = [8, 768], strides = [1, 1]} : vector<200x1024xf32> to vector<8x768xf32>
    %54 = arith.addf %52, %53 : vector<8x768xf32>
    %55 = vector.extract_strided_slice %5 {offsets = [192, 200], sizes = [8, 768], strides = [1, 1]} : vector<200x1024xf32> to vector<8x768xf32>
    %56 = arith.addf %54, %55 : vector<8x768xf32>
    %c0_7 = arith.constant 0 : index
    %c0_8 = arith.constant 0 : index
    %57 = vector.load %arg4[%c0_7, %c0_8] : memref<8x1xf32, #tpu.memory_space<vmem>>, vector<8x1xf32>
    %58 = vector.broadcast %57 : vector<8x1xf32> to vector<8x768xf32>
    %59 = arith.addf %56, %58 : vector<8x768xf32>
    %c0_9 = arith.constant 0 : index
    %c0_10 = arith.constant 0 : index
    %60 = vector.load %arg5[%c0_9, %c0_10] : memref<8x768xf32, #tpu.memory_space<vmem>>, vector<8x768xf32>
    tpu.vector_store %arg5[%c0_9, %c0_10], %59 {strides = array<i32>} : memref<8x768xf32, #tpu.memory_space<vmem>>, vector<8x768xf32>,
    return
  }
  func.func @transform_0(%arg0: i32) -> (i32, i32) {
    %c0_i32 = arith.constant 0 : i32
    %c0_i32_0 = arith.constant 0 : i32
    %c0_i32_1 = arith.constant 0 : i32
    return %c0_i32, %c0_i32_0 : i32, i32
  }
  func.func @transform_1(%arg0: i32) -> (i32, i32) {
    %c0_i32 = arith.constant 0 : i32
    %c0_i32_0 = arith.constant 0 : i32
    return %c0_i32, %arg0 : i32, i32
  }
  func.func @transform_2(%arg0: i32) -> (i32, i32) {
    %c1_i32 = arith.constant 1 : i32
    %0 = arith.addi %arg0, %c1_i32 : i32
    %c3_i32 = arith.constant 3 : i32
    %1 = arith.muli %0, %c3_i32 : i32
    %c0_i32 = arith.constant 0 : i32
    %c0_i32_0 = arith.constant 0 : i32
    return %c0_i32, %1 : i32, i32
  }
  func.func @transform_3(%arg0: i32) -> (i32, i32) {
    %c0_i32 = arith.constant 0 : i32
    %c0_i32_0 = arith.constant 0 : i32
    %c0_i32_1 = arith.constant 0 : i32
    return %c0_i32, %c0_i32_0 : i32, i32
  }
  func.func @transform_4(%arg0: i32) -> (i32, i32) {
    %c0_i32 = arith.constant 0 : i32
    %c0_i32_0 = arith.constant 0 : i32
    return %c0_i32, %arg0 : i32, i32
  }
}

</mosaic_0001>

<bundles_post_ra>
// kernel: classifier_module_forward.1
= control target key start
LH: loop header
LB: loop body
LE: loop exit
PB: predicated region body
PF: predicated region fallthrough
CT: control target
= control target key end

     0   :  { %s2297_s15 = smov 0   ;;  %s3388_s0 = inlined_call_operand.vmem [shape: bf16[200,4], index: 0, kind: input, shape index: {}]   ;;  %s3389_s1 = inlined_call_operand.vmem [shape: bf16[4,1792], index: 1, kind: input, shape index: {}, may-alias: {1,2}]   ;;  %s3390_s2 = inlined_call_operand.vmem [shape: bf16[4,1792], index: 2, kind: input, shape index: {}, may-alias: {1,2}]   ;;  %s3391_s3 = inlined_call_operand.vmem [shape: f32[8,1], index: 3, kind: input, shape index: {}]   ;;  %s3392_s4 = inlined_call_operand.vmem [shape: f32[8,1536], index: 4, kind: output, shape index: {}]  }
   0x1 LB: > { %s2030_s16 = sadd.s32 4294967295, %s2245_s15   ;;  %p2034_p0 = scmp.ge.s32.totalorder %s2245_s15, 1  ;;  %s2245_s15 = sphi %s2297_s15, %s14_s15  }
   0x2   : > { %p190_p1 = scmp.lt.s32.totalorder %s2245_s15, 3 }
   0x4   : > { %p191_p2 = pnand %p2034_p0, %p190_p1 }
   0x5   : > { %s2305_s17 = smul.u32 (!%p191_p2), 6, %s2030_s16  ;;  %s241_s18 = sadd.s32 (!%p191_p2), 1, %s2030_s16 }
   0x6   : > { %194 = sbr.rel (%p191_p2) target bundleno = 733 (0x2dd), region = 36  ;;  %s2247_s23 = smov (!%p191_p2), 124  }
   0x7   : > { %s2036_s19 = smul.u32 (!%p191_p2), 6, %s241_s18  ;;  %p232_p3 = scmp.lt.s32.totalorder (!%p191_p2), %s2305_s17, 13 }
   0x8   : > { %s2248_s26 = smov (!%p191_p2), 120   ;;  %s2249_s27 = smov (!%p191_p2), 78  }
   0x9   : > { %p244_p4 = scmp.lt.s32.totalorder (!%p191_p2), %s2036_s19, 13  ;;  %s2250_s30 = smov (!%p191_p2), 76  }
   0xa   : > { %s2251_s7 = smov (!%p191_p2), 74   ;;  %s2252_s10 = smov (!%p191_p2), 53  }
   0xb   : > { %s233_s20 = scalar_select %p232_p3, %s2305_s17, 13  ;;  %vm399_vm0 = vcmask 1041408   ;;  %v2320_v7 = vld [vmem:[%s3388_s0] sm:$0xff]  ;;  %vm3395_vm1 = vcmask 31744   ;;  %v2339_v20 = vld [vmem:[%s3388_s0 + $0x8] sm:$0xff]  ;;  %v2352_v21 = vld [vmem:[%s3388_s0 + $0x10] sm:$0xff] }
   0xc   : > { %s3429_s19 = smov (!%p244_p4, %s2036_s19), 13  ;;  %v2365_v22 = vld [vmem:[%s3388_s0 + $0x18] sm:$0xff]  ;;  %v2378_v23 = vld [vmem:[%s3388_s0 + $0x20] sm:$0xff]  ;;  %v2391_v24 = vld [vmem:[%s3388_s0 + $0x28] sm:$0xff]  ;;  %s2253_s11 = smov 52   ;;  %vm1006_vm2 = vcmask 1014784  }
   0xd   : > { %s2035_s21 = sshll.u32 %s233_s20, 1  ;;  %s2037_s25 = sshll.u32 %s3429_s19, 1  ;;  %v2404_v25 = vld [vmem:[%s3388_s0 + $0x30] sm:$0xff]  ;;  %v2417_v26 = vld [vmem:[%s3388_s0 + $0x38] sm:$0xff]  ;;  %v2434_v29 = vld [vmem:[%s3388_s0 + $0x40] sm:$0xff]  ;;  %vm1046_vm3 = vcmask 982016  }
   0xe   : > { %s235_s24 = scalar_lea.vmem %s3389_s1, %s2035_s21  ;;  %s247_s28 = scalar_lea.vmem %s3390_s2, %s2037_s25  ;;  %v2453_v37 = vld [vmem:[%s3388_s0 + $0x48] sm:$0xff]  ;;  %v2472_v46 = vld [vmem:[%s3388_s0 + $0x50] sm:$0xff]  ;;  %v2491_v55 = vld [vmem:[%s3388_s0 + $0x58] sm:$0xff]  ;;  %vm1086_vm4 = vcmask 637952   ;;  %vm1126_vm5 = vcmask 621568   ;;  %vm1166_vm6 = vcmask 605184  }
   0xf   : > { %v283_v0 = vld [vmem:[%s235_s24] sm:$0xff]  ;;  %v284_v11 = vld [vmem:[%s235_s24 + $0x8] sm:$0xf]  ;;  %s2254_s12 = smov 51   ;;  %s2255_s13 = smov 32   ;;  %vm1246_vm7 = vcmask 424960  }
  0x10   : > { %349 = vst [vmem:[#allocation1] ss:$4 sm:$0xff] %v283_v0  ;;  %v844_v1 = vld [vmem:[%s247_s28] sm:$0xf]  ;;  %s2256_s14 = smov 30   ;;  %s2257_s16 = smov 29  }
  0x11   : > { %352 = vst [vmem:[#allocation1 + $0x20] ss:$4 sm:$0xff] %v284_v11  ;;  %v282_v61 = vld [vmem:[%s3388_s0 + $0x60] sm:$0xf]  ;;  %s2258_s18 = smov 28   ;;  %s2259_s19 = smov 27  }
  0x12   : > { %v334_v62 = vunpack.c.l.b16 %v282_v61  ;;  %s2260_s20 = smov 26   ;;  %s2261_s21 = smov 24   ;;  %vm1206_vm8 = vcmask 433152   ;;  %vm1286_vm9 = vcmask 416768   ;;  %vm1326_vm10 = vcmask 261120  }
  0x13   : > { %s2262_s22 = smov 5   ;;  %s2263_s24 = smov 4   ;;  %vm1366_vm11 = vcmask 244736   ;;  %vm1406_vm12 = vcmask 236544   ;;  %vm1446_vm13 = vcmask 228352   ;;  %vm3393_vm14 = vcmask 220160  }
  0x14   : > { %s2264_s25 = smov 3   ;;  %s2265_s28 = smov 110   ;;  %vm1526_vm15 = vcmask 211968  }
  0x15   : > { %s2266_s29 = smov 108   ;;  %s2267_s5 = smov 106  }
  0x16   : > { %s2268_s6 = smov 64   ;;  %s2269_s8 = smov 60  }
  0x17   : > { %v353_v2 = vld.sshfl [vmem:[#allocation1] sm:$0xff pattern:$0x73625140]  ;;  %v354_v3 = vld.sshfl [vmem:[#allocation1 + $0x8] sm:$0xff pattern:$0x73625140] }
  0x18   : > { %v400_v4 = vsel %vm399_vm0, %v353_v2, 0  ;;  %v402_v5 = vsel %vm399_vm0, %v354_v3, 0  ;;  %v355_v6 = vld.sshfl [vmem:[#allocation1 + $0x10] sm:$0xff pattern:$0x73625140]  ;;  %v2510_v2 = vpack.c.b16 %v334_v62, %v334_v62  ;;  %s2270_s9 = smov 56  }
  0x19   : > { %419 = vmatpush.bf16.msra.mxu0 %v400_v4  ;;  %486 = vmatpush.bf16.msra.mxu1 %v402_v5  ;;  %v404_v8 = vsel %vm399_vm0, %v355_v6, 0  ;;  %v356_v9 = vld.sshfl [vmem:[#allocation1 + $0x18] sm:$0xff pattern:$0x73625140]  ;;  %p252_p5 = scmp.lt.s32.totalorder %s2305_s17, 11 }
  0x1a   : > { %559 = vmatpush.bf16.msra.mxu2 %v404_v8  ;;  %v406_v10 = vsel %vm399_vm0, %v356_v9, 0  ;;  %846 = vst [vmem:[#allocation1] ss:$4 sm:$0xff] %v844_v1  ;;  %v357_v16 = vld.sshfl [vmem:[#allocation1 + $0x20] sm:$0xff pattern:$0x73625140] }
  0x1b   : > { %632 = vmatpush.bf16.msra.mxu3 %v406_v10  ;;  %v358_v17 = vld.sshfl [vmem:[#allocation1 + $0x28] sm:$0xff pattern:$0x73625140]  ;;  %v408_v18 = vsel %vm399_vm0, %v357_v16, 0  ;;  %s3431_s17 = smov (!%p252_p5, %s2305_s17), 11 }
  0x1c   : > { %2087 = vmatmul.msk.bf16.vlgmr.msra.gmra.mxu0 %vm3395_vm1, %v2320_v7  ;;  %2100 = vmatmul.msk.bf16.vlgmr.msra.gmra.mxu1 %vm3395_vm1, %v2320_v7  ;;  %v410_v19 = vsel %vm399_vm0, %v358_v17, 0 }
  0x1d   : > { %2113 = vmatmul.msk.bf16.vlgmr.msra.gmra.mxu2 %vm3395_vm1, %v2320_v7  ;;  %705 = vmatpush.bf16.msrb.mxu0 %v408_v18 }
  0x1e   : > { %2126 = vmatmul.msk.bf16.vlgmr.msra.gmra.mxu3 %vm3395_vm1, %v2320_v7  ;;  %778 = vmatpush.bf16.msrb.mxu1 %v410_v19 }
  0x21   : > { %v847_v12 = vld.sshfl [vmem:[#allocation1] sm:$0xff pattern:$0x73625140]  ;;  %v848_v13 = vld.sshfl [vmem:[#allocation1 + $0x8] sm:$0xff pattern:$0x73625140] }
  0x22   : > { %v849_v14 = vsel %vm399_vm0, %v847_v12, 0  ;;  %v851_v15 = vsel %vm399_vm0, %v848_v13, 0  ;;  %vm3394_vm0 = vcmask 195584  }
  0x23   : > { %860 = vmatpush.bf16.msrb.mxu2 %v849_v14  ;;  %932 = vmatpush.bf16.msrb.mxu3 %v851_v15 }
  0x2c   : > { %2088 = vmatmul.msk.bf16.gmra.mxu0 %vm3395_vm1, %v2339_v20  ;;  %2101 = vmatmul.msk.bf16.gmra.mxu1 %vm3395_vm1, %v2339_v20 }
  0x2d   : > { %2114 = vmatmul.msk.bf16.gmra.mxu2 %vm3395_vm1, %v2339_v20 }
  0x2e   : > { %2127 = vmatmul.msk.bf16.gmra.mxu3 %vm3395_vm1, %v2339_v20 }
  0x3c   : > { %2089 = vmatmul.msk.bf16.gmra.mxu0 %vm3395_vm1, %v2352_v21  ;;  %2102 = vmatmul.msk.bf16.gmra.mxu1 %vm3395_vm1, %v2352_v21 }
  0x3d   : > { %2115 = vmatmul.msk.bf16.gmra.mxu2 %vm3395_vm1, %v2352_v21 }
  0x3e   : > { %2128 = vmatmul.msk.bf16.gmra.mxu3 %vm3395_vm1, %v2352_v21 }
  0x4c   : > { %2090 = vmatmul.msk.bf16.gmra.mxu0 %vm3395_vm1, %v2365_v22  ;;  %2103 = vmatmul.msk.bf16.gmra.mxu1 %vm3395_vm1, %v2365_v22 }
  0x4d   : > { %2116 = vmatmul.msk.bf16.gmra.mxu2 %vm3395_vm1, %v2365_v22 }
  0x4e   : > { %2129 = vmatmul.msk.bf16.gmra.mxu3 %vm3395_vm1, %v2365_v22 }
  0x5c   : > { %2091 = vmatmul.msk.bf16.gmra.mxu0 %vm3395_vm1, %v2378_v23  ;;  %2104 = vmatmul.msk.bf16.gmra.mxu1 %vm3395_vm1, %v2378_v23 }
  0x5d   : > { %2117 = vmatmul.msk.bf16.gmra.mxu2 %vm3395_vm1, %v2378_v23 }
  0x5e   : > { %2130 = vmatmul.msk.bf16.gmra.mxu3 %vm3395_vm1, %v2378_v23 }
  0x6c   : > { %2092 = vmatmul.msk.bf16.gmra.mxu0 %vm3395_vm1, %v2391_v24  ;;  %2105 = vmatmul.msk.bf16.gmra.mxu1 %vm3395_vm1, %v2391_v24 }
  0x6d   : > { %2118 = vmatmul.msk.bf16.gmra.mxu2 %vm3395_vm1, %v2391_v24 }
  0x6e   : > { %2131 = vmatmul.msk.bf16.gmra.mxu3 %vm3395_vm1, %v2391_v24 }
  0x7c   : > { %2093 = vmatmul.msk.bf16.gmra.mxu0 %vm3395_vm1, %v2404_v25  ;;  %2106 = vmatmul.msk.bf16.gmra.mxu1 %vm3395_vm1, %v2404_v25 }
  0x7d   : > { %2119 = vmatmul.msk.bf16.gmra.mxu2 %vm3395_vm1, %v2404_v25 }
  0x7e   : > { %2132 = vmatmul.msk.bf16.gmra.mxu3 %vm3395_vm1, %v2404_v25 }
  0x8c   : > { %2094 = vmatmul.msk.bf16.gmra.mxu0 %vm3395_vm1, %v2417_v26  ;;  %2107 = vmatmul.msk.bf16.gmra.mxu1 %vm3395_vm1, %v2417_v26 }
  0x8d   : > { %2120 = vmatmul.msk.bf16.gmra.mxu2 %vm3395_vm1, %v2417_v26 }
  0x8e   : > { %2133 = vmatmul.msk.bf16.gmra.mxu3 %vm3395_vm1, %v2417_v26 }
  0x99   : > { %v2427_v27 = vpop.f32.mrf.mxu0  ;;  %v2429_v28 = vpop.f32.mrf.mxu1 }
  0x9c   : > { %2095 = vmatmul.msk.bf16.gmra.mxu0 %vm3395_vm1, %v2434_v29  ;;  %2108 = vmatmul.msk.bf16.gmra.mxu1 %vm3395_vm1, %v2434_v29 }
  0x9d   : > { %2121 = vmatmul.msk.bf16.gmra.mxu2 %vm3395_vm1, %v2434_v29 }
  0x9e   : > { %2134 = vmatmul.msk.bf16.gmra.mxu3 %vm3395_vm1, %v2434_v29 }
  0xa0   : > { %v2444_v30 = vpop.f32.mrf.mxu2 }
  0xa1   : > { %v2446_v31 = vpop.f32.mrf.mxu3  ;;  %v423_v32 = vpop.f32.mrf.mxu0 }
  0xa2   : > { %v490_v33 = vpop.f32.mrf.mxu1  ;;  %992 = vrot.lane.b32.xlu0 %v423_v32, %s2247_s23 }
  0xa8   : > { %v563_v34 = vpop.f32.mrf.mxu2 }
  0xa9   : > { %v636_v35 = vpop.f32.mrf.mxu3  ;;  %996 = vrot.lane.b32.xlu1 %v563_v34, %s2247_s23  ;;  %v426_v36 = vpop.f32.mrf.mxu0 }
  0xaa   : > { %v493_v38 = vpop.f32.mrf.mxu1  ;;  %994 = vrot.lane.b32.xlu0 %v490_v33, %s2247_s23 }
  0xab   : > { %1034 = vrot.lane.b32.xlu2 %v493_v38, %s2248_s26 }
  0xac   : > { %2096 = vmatmul.msk.bf16.gmra.mxu0 %vm3395_vm1, %v2453_v37  ;;  %2109 = vmatmul.msk.bf16.gmra.mxu1 %vm3395_vm1, %v2453_v37 }
  0xad   : > { %2122 = vmatmul.msk.bf16.gmra.mxu2 %vm3395_vm1, %v2453_v37 }
  0xae   : > { %2135 = vmatmul.msk.bf16.gmra.mxu3 %vm3395_vm1, %v2453_v37 }
  0xb0   : > { %v566_v39 = vpop.f32.mrf.mxu2 }
  0xb1   : > { %998 = vrot.lane.b32.xlu1 %v636_v35, %s2247_s23  ;;  %v428_v40 = vpop.f32.mrf.mxu0  ;;  %v639_v41 = vpop.f32.mrf.mxu3 }
  0xb2   : > { %v495_v42 = vpop.f32.mrf.mxu1  ;;  %1036 = vrot.lane.b32.xlu0 %v566_v39, %s2248_s26 }
  0xb3   : > { %1072 = vrot.lane.b32.xlu2 %v428_v40, %s2249_s27 }
  0xb8   : > { %v568_v43 = vpop.f32.mrf.mxu2 }
  0xb9   : > { %1032 = vrot.lane.b32.xlu1 %v426_v36, %s2248_s26  ;;  %v641_v44 = vpop.f32.mrf.mxu3  ;;  %v431_v45 = vpop.f32.mrf.mxu0 }
  0xba   : > { %1074 = vrot.lane.b32.xlu0 %v495_v42, %s2249_s27  ;;  %v498_v47 = vpop.f32.mrf.mxu1 }
  0xbb   : > { %1078 = vrot.lane.b32.xlu2 %v641_v44, %s2249_s27 }
  0xbc   : > { %2097 = vmatmul.msk.bf16.gmra.mxu0 %vm3395_vm1, %v2472_v46  ;;  %2110 = vmatmul.msk.bf16.gmra.mxu1 %vm3395_vm1, %v2472_v46 }
  0xbd   : > { %2123 = vmatmul.msk.bf16.gmra.mxu2 %vm3395_vm1, %v2472_v46 }
  0xbe   : > { %2136 = vmatmul.msk.bf16.gmra.mxu3 %vm3395_vm1, %v2472_v46 }
  0xc0   : > { %v571_v48 = vpop.f32.mrf.mxu2 }
  0xc1   : > { %1038 = vrot.lane.b32.xlu1 %v639_v41, %s2248_s26  ;;  %v644_v49 = vpop.f32.mrf.mxu3  ;;  %v433_v50 = vpop.f32.mrf.mxu0 }
  0xc2   : > { %1112 = vrot.lane.b32.xlu0 %v431_v45, %s2250_s30  ;;  %v500_v51 = vpop.f32.mrf.mxu1 }
  0xc3   : > { %1116 = vrot.lane.b32.xlu2 %v571_v48, %s2250_s30 }
  0xc8   : > { %v573_v52 = vpop.f32.mrf.mxu2 }
  0xc9   : > { %1076 = vrot.lane.b32.xlu1 %v568_v43, %s2249_s27  ;;  %v646_v53 = vpop.f32.mrf.mxu3  ;;  %v436_v54 = vpop.f32.mrf.mxu0 }
  0xca   : > { %1118 = vrot.lane.b32.xlu0 %v644_v49, %s2250_s30  ;;  %v503_v56 = vpop.f32.mrf.mxu1 }
  0xcb   : > { %1154 = vrot.lane.b32.xlu2 %v500_v51, %s2251_s7 }
  0xcc   : > { %2098 = vmatmul.msk.bf16.gmra.mxu0 %vm3395_vm1, %v2491_v55  ;;  %2111 = vmatmul.msk.bf16.gmra.mxu1 %vm3395_vm1, %v2491_v55 }
  0xcd   : > { %2124 = vmatmul.msk.bf16.gmra.mxu2 %vm3395_vm1, %v2491_v55 }
  0xce   : > { %2137 = vmatmul.msk.bf16.gmra.mxu3 %vm3395_vm1, %v2491_v55 }
  0xd0   : > { %v576_v57 = vpop.f32.mrf.mxu2 }
  0xd1   : > { %1114 = vrot.lane.b32.xlu1 %v498_v47, %s2250_s30  ;;  %v649_v58 = vpop.f32.mrf.mxu3  ;;  %v438_v59 = vpop.f32.mrf.mxu0 }
  0xd2   : > { %1156 = vrot.lane.b32.xlu0 %v573_v52, %s2251_s7  ;;  %v505_v60 = vpop.f32.mrf.mxu1 }
  0xd3   : > { %1192 = vrot.lane.b32.xlu2 %v436_v54, %s2252_s10 }
  0xd8   : > { %v578_v63 = vpop.f32.mrf.mxu2 }
  0xd9   : > { %1152 = vrot.lane.b32.xlu1 %v433_v50, %s2251_s7  ;;  %v651_v0 = vpop.f32.mrf.mxu3  ;;  %v441_v1 = vpop.f32.mrf.mxu0 }
  0xda   : > { %1194 = vrot.lane.b32.xlu0 %v503_v56, %s2252_s10  ;;  %v508_v3 = vpop.f32.mrf.mxu1 }
  0xdb   : > { %1198 = vrot.lane.b32.xlu2 %v649_v58, %s2252_s10 }
  0xdc   : > { %2099 = vmatmul.msk.bf16.gmra.mxu0 %vm3395_vm1, %v2510_v2  ;;  %2112 = vmatmul.msk.bf16.gmra.mxu1 %vm3395_vm1, %v2510_v2 }
  0xdd   : > { %2125 = vmatmul.msk.bf16.gmra.mxu2 %vm3395_vm1, %v2510_v2 }
  0xde   : > { %2138 = vmatmul.msk.bf16.gmra.mxu3 %vm3395_vm1, %v2510_v2 }
  0xe0   : > { %v581_v4 = vpop.f32.mrf.mxu2 }
  0xe1   : > { %1158 = vrot.lane.b32.xlu1 %v646_v53, %s2251_s7  ;;  %v443_v5 = vpop.f32.mrf.mxu0  ;;  %v654_v6 = vpop.f32.mrf.mxu3 }
  0xe2   : > { %1232 = vrot.lane.b32.xlu0 %v438_v59, %s2253_s11  ;;  %v510_v8 = vpop.f32.mrf.mxu1 }
  0xe3   : > { %1236 = vrot.lane.b32.xlu2 %v578_v63, %s2253_s11 }
  0xe8   : > { %v583_v9 = vpop.f32.mrf.mxu2 }
  0xe9   : > { %1196 = vrot.lane.b32.xlu1 %v576_v57, %s2252_s10  ;;  %v656_v10 = vpop.f32.mrf.mxu3  ;;  %v446_v11 = vpop.f32.mrf.mxu0 }
  0xea   : > { %1238 = vrot.lane.b32.xlu0 %v651_v0, %s2253_s11  ;;  %v513_v12 = vpop.f32.mrf.mxu1 }
  0xeb   : > { %1274 = vrot.lane.b32.xlu2 %v508_v3, %s2254_s12 }
  0xec   : > { %2139 = vmatmul.msk.bf16.vlgmr.msrb.gmra.mxu0 %vm3395_vm1, %v2320_v7  ;;  %2152 = vmatmul.msk.bf16.vlgmr.msrb.gmra.mxu1 %vm3395_vm1, %v2320_v7 }
  0xed   : > { %2165 = vmatmul.msk.bf16.vlgmr.msrb.gmra.mxu2 %vm3395_vm1, %v2320_v7 }
  0xee   : > { %2178 = vmatmul.msk.bf16.vlgmr.msrb.gmra.mxu3 %vm3395_vm1, %v2320_v7 }
  0xf0   : > { %v586_v13 = vpop.f32.mrf.mxu2 }
  0xf1   : > { %1234 = vrot.lane.b32.xlu1 %v505_v60, %s2253_s11  ;;  %v659_v14 = vpop.f32.mrf.mxu3  ;;  %v448_v15 = vpop.f32.mrf.mxu0 }
  0xf2   : > { %1276 = vrot.lane.b32.xlu0 %v581_v4, %s2254_s12  ;;  %v515_v16 = vpop.f32.mrf.mxu1 }
  0xf3   : > { %1312 = vrot.lane.b32.xlu2 %v443_v5, %s2255_s13 }
  0xf8   : > { %v588_v17 = vpop.f32.mrf.mxu2 }
  0xf9   : > { %1272 = vrot.lane.b32.xlu1 %v441_v1, %s2254_s12  ;;  %v661_v18 = vpop.f32.mrf.mxu3  ;;  %v451_v19 = vpop.f32.mrf.mxu0 }
  0xfa   : > { %1314 = vrot.lane.b32.xlu0 %v510_v8, %s2255_s13  ;;  %v518_v32 = vpop.f32.mrf.mxu1 }
  0xfb   : > { %1318 = vrot.lane.b32.xlu2 %v656_v10, %s2255_s13 }
  0xfc   : > { %2140 = vmatmul.msk.bf16.gmra.mxu0 %vm3395_vm1, %v2339_v20  ;;  %2153 = vmatmul.msk.bf16.gmra.mxu1 %vm3395_vm1, %v2339_v20 }
  0xfd   : > { %2166 = vmatmul.msk.bf16.gmra.mxu2 %vm3395_vm1, %v2339_v20 }
  0xfe   : > { %2179 = vmatmul.msk.bf16.gmra.mxu3 %vm3395_vm1, %v2339_v20 }
 0x100   : > { %v591_v7 = vpop.f32.mrf.mxu2 }
 0x101   : > { %1278 = vrot.lane.b32.xlu1 %v654_v6, %s2254_s12  ;;  %v664_v33 = vpop.f32.mrf.mxu3  ;;  %v453_v34 = vpop.f32.mrf.mxu0 }
 0x102   : > { %1352 = vrot.lane.b32.xlu0 %v446_v11, %s2256_s14  ;;  %v2552_v35 = vpop.f32.mrf.mxu1 }
 0x103   : > { %1356 = vrot.lane.b32.xlu2 %v586_v13, %s2256_s14 }
 0x105   : > { %v2555_v36 = vpop.permute.xlu2 %1034 }
 0x108   : > { %v593_v38 = vpop.f32.mrf.mxu2 }
 0x109   : > { %1316 = vrot.lane.b32.xlu1 %v583_v9, %s2255_s13  ;;  %v666_v39 = vpop.f32.mrf.mxu3  ;;  %v2558_v40 = vpop.f32.mrf.mxu0 }
 0x10a   : > { %1358 = vrot.lane.b32.xlu0 %v659_v14, %s2256_s14  ;;  %v523_v20 = vpop.f32.mrf.mxu1 }
 0x10b   : > { %1394 = vrot.lane.b32.xlu2 %v515_v16, %s2257_s16 }
 0x10c   : > { %2141 = vmatmul.msk.bf16.gmra.mxu0 %vm3395_vm1, %v2352_v21  ;;  %2154 = vmatmul.msk.bf16.gmra.mxu1 %vm3395_vm1, %v2352_v21 }
 0x10d   : > { %v2566_v41 = vpop.permute.xlu2 %1072  ;;  %2167 = vmatmul.msk.bf16.gmra.mxu2 %vm3395_vm1, %v2352_v21 }
 0x10e   : > { %2180 = vmatmul.msk.bf16.gmra.mxu3 %vm3395_vm1, %v2352_v21 }
 0x110   : > { %v596_v42 = vpop.f32.mrf.mxu2 }
 0x111   : > { %1354 = vrot.lane.b32.xlu1 %v513_v12, %s2256_s14  ;;  %v2573_v43 = vpop.f32.mrf.mxu3  ;;  %v458_v44 = vpop.f32.mrf.mxu0 }
 0x112   : > { %1396 = vrot.lane.b32.xlu0 %v588_v17, %s2257_s16  ;;  %v525_v45 = vpop.f32.mrf.mxu1 }
 0x113   : > { %1432 = vrot.lane.b32.xlu2 %v451_v19, %s2258_s18 }
 0x114   : > { %v2577_v47 = vpop.permute.xlu0 %992 }
 0x115   : > { %v2579_v48 = vpop.permute.xlu2 %1078 }
 0x118   : > { %v2581_v49 = vpop.f32.mrf.mxu2 }
 0x119   : > { %1392 = vrot.lane.b32.xlu1 %v448_v15, %s2257_s16  ;;  %v671_v21 = vpop.f32.mrf.mxu3  ;;  %v2584_v50 = vpop.f32.mrf.mxu0 }
 0x11a   : > { %1434 = vrot.lane.b32.xlu0 %v518_v32, %s2258_s18  ;;  %v2587_v51 = vpop.f32.mrf.mxu1 }
 0x11b   : > { %v2589_v52 = vpop.permute.xlu1 %996  ;;  %1438 = vrot.lane.b32.xlu2 %v664_v33, %s2258_s18 }
 0x11c   : > { %v2592_v53 = vpop.permute.xlu0 %994  ;;  %2142 = vmatmul.msk.bf16.gmra.mxu0 %vm3395_vm1, %v2365_v22  ;;  %2155 = vmatmul.msk.bf16.gmra.mxu1 %vm3395_vm1, %v2365_v22 }
 0x11d   : > { %v2598_v54 = vpop.permute.xlu2 %1116  ;;  %2168 = vmatmul.msk.bf16.gmra.mxu2 %vm3395_vm1, %v2365_v22 }
 0x11e   : > { %2181 = vmatmul.msk.bf16.gmra.mxu3 %vm3395_vm1, %v2365_v22 }
 0x120   : > { %v601_v56 = vpop.f32.mrf.mxu2 }
 0x121   : > { %1398 = vrot.lane.b32.xlu1 %v661_v18, %s2257_s16  ;;  %v2605_v57 = vpop.f32.mrf.mxu3  ;;  %v2607_v58 = vpop.f32.mrf.mxu0 }
 0x122   : > { %1472 = vrot.lane.b32.xlu0 %v453_v34, %s2259_s19  ;;  %v2610_v59 = vpop.f32.mrf.mxu1 }
 0x123   : > { %v2612_v60 = vpop.permute.xlu1 %998  ;;  %1476 = vrot.lane.b32.xlu2 %v593_v38, %s2259_s19 }
 0x124   : > { %v2615_v61 = vpop.permute.xlu0 %1036 }
 0x125   : > { %v2617_v62 = vpop.permute.xlu2 %1154 }
 0x128   : > { %v2619_v22 = vpop.f32.mrf.mxu2 }
 0x129   : > { %1436 = vrot.lane.b32.xlu1 %v591_v7, %s2258_s18  ;;  %v2622_v63 = vpop.f32.mrf.mxu3  ;;  %v2624_v0 = vpop.f32.mrf.mxu0 }
 0x12a   : > { %1478 = vrot.lane.b32.xlu0 %v666_v39, %s2259_s19  ;;  %v2627_v1 = vpop.f32.mrf.mxu1 }
 0x12b   : > { %v2629_v3 = vpop.permute.xlu1 %1032  ;;  %1514 = vrot.lane.b32.xlu2 %v523_v20, %s2260_s20 }
 0x12c   : > { %v2632_v4 = vpop.permute.xlu0 %1074  ;;  %2143 = vmatmul.msk.bf16.gmra.mxu0 %vm3395_vm1, %v2378_v23  ;;  %2156 = vmatmul.msk.bf16.gmra.mxu1 %vm3395_vm1, %v2378_v23 }
 0x12d   : > { %v2638_v5 = vpop.permute.xlu2 %1192  ;;  %2169 = vmatmul.msk.bf16.gmra.mxu2 %vm3395_vm1, %v2378_v23 }
 0x12e   : > { %2182 = vmatmul.msk.bf16.gmra.mxu3 %vm3395_vm1, %v2378_v23 }
 0x130   : > { %v2644_v6 = vpop.f32.mrf.mxu2 }
 0x131   : > { %1474 = vrot.lane.b32.xlu1 %v2552_v35, %s2259_s19  ;;  %v2648_v8 = vpop.f32.mrf.mxu3  ;;  %v468_v9 = vpop.f32.mrf.mxu0 }
 0x132   : > { %1516 = vrot.lane.b32.xlu0 %v596_v42, %s2260_s20  ;;  %v2651_v10 = vpop.f32.mrf.mxu1 }
 0x133   : > { %v2653_v11 = vpop.permute.xlu1 %1038  ;;  %1552 = vrot.lane.b32.xlu2 %v458_v44, %s2261_s21 }
 0x134   : > { %v2656_v12 = vpop.permute.xlu0 %1112 }
 0x135   : > { %v2658_v23 = vpop.permute.xlu2 %1198 }
 0x138   : > { %v2660_v13 = vpop.f32.mrf.mxu2 }
 0x139   : > { %1512 = vrot.lane.b32.xlu1 %v2558_v40, %s2260_s20  ;;  %v2664_v14 = vpop.f32.mrf.mxu3  ;;  %v470_v15 = vpop.f32.mrf.mxu0 }
 0x13a   : > { %1554 = vrot.lane.b32.xlu0 %v525_v45, %s2261_s21  ;;  %v2667_v16 = vpop.f32.mrf.mxu1 }
 0x13b   : > { %v1077_v17 = vpop.permute.xlu1 %1076  ;;  %1558 = vrot.lane.b32.xlu2 %v671_v21, %s2261_s21  ;;  %v1049_v21 = vsel %vm1046_vm3, %v2615_v61, %v2653_v11 }
 0x13c   : > { %v2670_v18 = vpop.permute.xlu0 %1118  ;;  %2144 = vmatmul.msk.bf16.gmra.mxu0 %vm3395_vm1, %v2391_v24  ;;  %2157 = vmatmul.msk.bf16.gmra.mxu1 %vm3395_vm1, %v2391_v24  ;;  %v1089_v9 = vsel %vm1086_vm4, %v1077_v17, %v2579_v48 }
 0x13d   : > { %v2676_v19 = vpop.permute.xlu2 %1236  ;;  %2170 = vmatmul.msk.bf16.gmra.mxu2 %vm3395_vm1, %v2391_v24 }
 0x13e   : > { %2183 = vmatmul.msk.bf16.gmra.mxu3 %vm3395_vm1, %v2391_v24 }
 0x140   : > { %v2682_v32 = vpop.f32.mrf.mxu2 }
 0x141   : > { %1518 = vrot.lane.b32.xlu1 %v2573_v43, %s2260_s20  ;;  %v2686_v7 = vpop.f32.mrf.mxu3  ;;  %v471_v33 = vpop.f32.mrf.mxu0 }
 0x142   : > { %1592 = vrot.lane.b32.xlu0 %v2584_v50, %s2262_s22  ;;  %v2690_v34 = vpop.f32.mrf.mxu1 }
 0x143   : > { %v2692_v35 = vpop.permute.xlu1 %1114  ;;  %1596 = vrot.lane.b32.xlu2 %v601_v56, %s2262_s22 }
 0x144   : > { %v2695_v38 = vpop.permute.xlu0 %1156 }
 0x145   : > { %v2697_v24 = vpop.permute.xlu2 %1274 }
 0x148   : > { %v2699_v39 = vpop.f32.mrf.mxu2 }
 0x149   : > { %1556 = vrot.lane.b32.xlu1 %v2581_v49, %s2261_s21  ;;  %v2703_v40 = vpop.f32.mrf.mxu3  ;;  %v473_v20 = vpop.f32.mrf.mxu0  ;;  %v1009_v49 = vsel %vm1006_vm2, %v2589_v52, %v2612_v60 }
 0x14a   : > { %1598 = vrot.lane.b32.xlu0 %v2605_v57, %s2262_s22  ;;  %v2707_v42 = vpop.f32.mrf.mxu1  ;;  %v1021_v56 = vadd.f32 %v1009_v49, %v2444_v30  ;;  %v1008_v30 = vsel %vm1006_vm2, %v2592_v53, %v2589_v52  ;;  %v1088_v52 = vsel %vm1086_vm4, %v2632_v4, %v1077_v17 }
 0x14b   : > { %v2709_v43 = vpop.permute.xlu1 %1152  ;;  %1634 = vrot.lane.b32.xlu2 %v2610_v59, %s2263_s24 }
 0x14c   : > { %v2713_v44 = vpop.permute.xlu0 %1194  ;;  %2145 = vmatmul.msk.bf16.gmra.mxu0 %vm3395_vm1, %v2404_v25  ;;  %2158 = vmatmul.msk.bf16.gmra.mxu1 %vm3395_vm1, %v2404_v25  ;;  %v1061_v15 = vadd.f32 %v1049_v21, %v1021_v56  ;;  %v1129_v21 = vsel %vm1126_vm5, %v2598_v54, %v2670_v18  ;;  %v1020_v56 = vadd.f32 %v1008_v30, %v2429_v28 }
 0x14d   : > { %v2719_v45 = vpop.permute.xlu2 %1312  ;;  %2171 = vmatmul.msk.bf16.gmra.mxu2 %vm3395_vm1, %v2404_v25 }
 0x14e   : > { %2184 = vmatmul.msk.bf16.gmra.mxu3 %vm3395_vm1, %v2404_v25  ;;  %v1101_v20 = vadd.f32 %v1089_v9, %v1061_v15 }
 0x150   : > { %v2731_v50 = vpop.f32.mrf.mxu2  ;;  %v1141_v15 = vadd.f32 %v1129_v21, %v1101_v20 }
 0x151   : > { %1594 = vrot.lane.b32.xlu1 %v2587_v51, %s2262_s22  ;;  %v2736_v57 = vpop.f32.mrf.mxu3  ;;  %v474_v59 = vpop.f32.mrf.mxu0 }
 0x152   : > { %1636 = vrot.lane.b32.xlu0 %v2619_v22, %s2263_s24  ;;  %v2742_v25 = vpop.f32.mrf.mxu1  ;;  %v1048_v22 = vsel %vm1046_vm3, %v2555_v36, %v2615_v61 }
 0x153   : > { %v2744_v33 = vpop.permute.xlu1 %1158  ;;  %1671 = vrot.lane.b32.xlu2 %v2624_v0, %s2264_s25  ;;  %v1007_v0 = vsel %vm1006_vm2, %v2577_v47, %v2592_v53  ;;  %v1060_v61 = vadd.f32 %v1048_v22, %v1020_v56  ;;  %v1047_v47 = vsel %vm1046_vm3, %v2629_v3, %v2555_v36  ;;  %v1128_v53 = vsel %vm1126_vm5, %v2692_v35, %v2598_v54 }
 0x154   : > { %v1233_v51 = vpop.permute.xlu0 %1232  ;;  %v1169_v59 = vsel %vm1166_vm6, %v2695_v38, %v2744_v33  ;;  %v1019_v20 = vadd.f32 %v1007_v0, %v2427_v27 }
 0x155   : > { %v2751_v49 = vpop.permute.xlu2 %1318  ;;  %v1181_v22 = vadd.f32 %v1169_v59, %v1141_v15 }
 0x156   : > { %v1059_v54 = vadd.f32 %v1047_v47, %v1019_v20 }
 0x158   : > { %v2768_v9 = vpop.f32.mrf.mxu2 }
 0x159   : > { %1632 = vrot.lane.b32.xlu1 %v2607_v58, %s2263_s24  ;;  %v2772_v28 = vpop.f32.mrf.mxu3  ;;  %v476_v30 = vpop.f32.mrf.mxu0  ;;  %v1100_v58 = vadd.f32 %v1088_v52, %v1060_v61  ;;  %v1168_v52 = vsel %vm1166_vm6, %v2617_v62, %v2695_v38  ;;  %v1127_v61 = vsel %vm1126_vm5, %v2656_v12, %v2692_v35 }
 0x15a   : > { %1673 = vrot.lane.b32.xlu0 %v2627_v1, %s2264_s25  ;;  %v2782_v17 = vpop.f32.mrf.mxu1 }
 0x15b   : > { %v1197_v21 = vpop.permute.xlu1 %1196  ;;  %1677 = vrot.lane.b32.xlu2 %v2648_v8, %s2264_s25  ;;  %v1140_v27 = vadd.f32 %v1128_v53, %v1100_v58  ;;  %v1087_v8 = vsel %vm1086_vm4, %v2566_v41, %v2632_v4 }
 0x15c   : > { %v1209_v36 = vsel %vm1206_vm8, %v1197_v21, %v2658_v23  ;;  %v2789_v3 = vpop.permute.xlu0 %1238  ;;  %2146 = vmatmul.msk.bf16.gmra.mxu0 %vm3395_vm1, %v2417_v26  ;;  %2159 = vmatmul.msk.bf16.gmra.mxu1 %vm3395_vm1, %v2417_v26  ;;  %v1208_v15 = vsel %vm1206_vm8, %v2713_v44, %v1197_v21  ;;  %v1099_v47 = vadd.f32 %v1087_v8, %v1059_v54 }
 0x15d   : > { %v1221_v1 = vadd.f32 %v1209_v36, %v1181_v22  ;;  %v1249_v56 = vsel %vm1246_vm7, %v2676_v19, %v2789_v3  ;;  %v2798_v0 = vpop.permute.xlu2 %1356  ;;  %2172 = vmatmul.msk.bf16.gmra.mxu2 %vm3395_vm1, %v2417_v26  ;;  %v1180_v53 = vadd.f32 %v1168_v52, %v1140_v27  ;;  %v1207_v36 = vsel %vm1206_vm8, %v2638_v5, %v2713_v44 }
 0x15e   : > { %2185 = vmatmul.msk.bf16.gmra.mxu3 %vm3395_vm1, %v2417_v26  ;;  %v1167_v26 = vsel %vm1166_vm6, %v2709_v43, %v2617_v62  ;;  %v1139_v35 = vadd.f32 %v1127_v61, %v1099_v47 }
 0x15f   : > { %v1261_v59 = vadd.f32 %v1249_v56, %v1221_v1  ;;  %v1220_v38 = vadd.f32 %v1208_v15, %v1180_v53 }
 0x160   : > { %v2815_v30 = vpop.f32.mrf.mxu2  ;;  %v1179_v21 = vadd.f32 %v1167_v26, %v1139_v35 }
 0x161   : > { %1638 = vrot.lane.b32.xlu1 %v2622_v63, %s2263_s24  ;;  %v2819_v41 = vpop.f32.mrf.mxu3  ;;  %v477_v4 = vpop.f32.mrf.mxu0 }
 0x162   : > { %1711 = vrot.lane.b32.xlu0 %v2651_v10, %s2265_s28  ;;  %v550_v12 = vpop.f32.mrf.mxu1 }
 0x163   : > { %v1235_v20 = vpop.permute.xlu1 %1234  ;;  %1715 = vrot.lane.b32.xlu2 %v2664_v14, %s2265_s28  ;;  %v1219_v14 = vadd.f32 %v1207_v36, %v1179_v21 }
 0x164   : > { %v1247_v63 = vsel %vm1246_vm7, %v1233_v51, %v1235_v20  ;;  %v1248_v58 = vsel %vm1246_vm7, %v1235_v20, %v2676_v19  ;;  %v1277_v22 = vpop.permute.xlu0 %1276 }
 0x165   : > { %v1260_v62 = vadd.f32 %v1248_v58, %v1220_v38  ;;  %v1288_v43 = vsel %vm1286_vm9, %v2697_v24, %v1277_v22  ;;  %v2833_v10 = vpop.permute.xlu2 %1394  ;;  %v1259_v56 = vadd.f32 %v1247_v63, %v1219_v14 }
 0x167   : > { %v1300_v54 = vadd.f32 %v1288_v43, %v1260_v62 }
 0x168   : > { %v623_v27 = vpop.f32.mrf.mxu2 }
 0x169   : > { %1675 = vrot.lane.b32.xlu1 %v2644_v6, %s2264_s25  ;;  %v696_v51 = vpop.f32.mrf.mxu3  ;;  %v2840_v19 = vpop.f32.mrf.mxu0 }
 0x16a   : > { %1755 = vrot.lane.b32.xlu0 %v2686_v7, %s2266_s29  ;;  %v2844_v1 = vpop.f32.mrf.mxu1 }
 0x16b   : > { %v1273_v8 = vpop.permute.xlu1 %1272  ;;  %1753 = vrot.lane.b32.xlu2 %v2682_v32, %s2266_s29 }
 0x16c   : > { %v1287_v5 = vsel %vm1286_vm9, %v1273_v8, %v2697_v24  ;;  %v1315_v44 = vpop.permute.xlu0 %1314  ;;  %2147 = vmatmul.msk.bf16.gmra.mxu0 %vm3395_vm1, %v2434_v29  ;;  %2160 = vmatmul.msk.bf16.gmra.mxu1 %vm3395_vm1, %v2434_v29 }
 0x16d   : > { %v1299_v6 = vadd.f32 %v1287_v5, %v1259_v56  ;;  %v1327_v7 = vsel %vm1326_vm10, %v2719_v45, %v1315_v44  ;;  %v2856_v52 = vpop.permute.xlu2 %1432  ;;  %2173 = vmatmul.msk.bf16.gmra.mxu2 %vm3395_vm1, %v2434_v29 }
 0x16e   : > { %2186 = vmatmul.msk.bf16.gmra.mxu3 %vm3395_vm1, %v2434_v29 }
 0x16f   : > { %v1339_v32 = vadd.f32 %v1327_v7, %v1299_v6 }
 0x170   : > { %v862_v24 = vpop.f32.mrf.mxu2 }
 0x171   : > { %1713 = vrot.lane.b32.xlu1 %v2660_v13, %s2265_s28  ;;  %v934_v61 = vpop.f32.mrf.mxu3  ;;  %v2864_v15 = vpop.f32.mrf.mxu0 }
 0x172   : > { %1793 = vrot.lane.b32.xlu0 %v2699_v39, %s2267_s5  ;;  %v2868_v45 = vpop.f32.mrf.mxu1 }
 0x173   : > { %v2870_v47 = vpop.permute.xlu1 %1278  ;;  %1791 = vrot.lane.b32.xlu2 %v2690_v34, %s2267_s5 }
 0x174   : > { %v1289_v29 = vsel %vm1286_vm9, %v1277_v22, %v2870_v47  ;;  %v1353_v53 = vpop.permute.xlu0 %1352 }
 0x175   : > { %v1301_v4 = vadd.f32 %v1289_v29, %v1261_v59  ;;  %v2876_v13 = vpop.permute.xlu2 %1438 }
 0x178   : > { %v2878_v26 = vpop.f32.mrf.mxu2 }
 0x179   : > { %1751 = vrot.lane.b32.xlu1 %v2667_v16, %s2266_s29  ;;  %v935_v39 = vpop.f32.mrf.mxu3  ;;  %v2882_v12 = vpop.f32.mrf.mxu0 }
 0x17a   : > { %1831 = vrot.lane.b32.xlu0 %v2707_v42, %s2268_s6  ;;  %v2886_v34 = vpop.f32.mrf.mxu1 }
 0x17b   : > { %v1317_v35 = vpop.permute.xlu1 %1316  ;;  %1835 = vrot.lane.b32.xlu2 %v2736_v57, %s2268_s6 }
 0x17c   : > { %v1328_v59 = vsel %vm1326_vm10, %v1315_v44, %v1317_v35  ;;  %v1329_v38 = vsel %vm1326_vm10, %v1317_v35, %v2751_v49  ;;  %v2893_v16 = vpop.permute.xlu0 %1358  ;;  %2148 = vmatmul.msk.bf16.gmra.mxu0 %vm3395_vm1, %v2453_v37  ;;  %2161 = vmatmul.msk.bf16.gmra.mxu1 %vm3395_vm1, %v2453_v37 }
 0x17d   : > { %v1340_v42 = vadd.f32 %v1328_v59, %v1300_v54  ;;  %v1341_v20 = vadd.f32 %v1329_v38, %v1301_v4  ;;  %v1369_v63 = vsel %vm1366_vm11, %v2798_v0, %v2893_v16  ;;  %v2902_v57 = vpop.permute.xlu2 %1476  ;;  %2174 = vmatmul.msk.bf16.gmra.mxu2 %vm3395_vm1, %v2453_v37 }
 0x17e   : > { %2187 = vmatmul.msk.bf16.gmra.mxu3 %vm3395_vm1, %v2453_v37 }
 0x17f   : > { %v1381_v58 = vadd.f32 %v1369_v63, %v1341_v20 }
 0x180   : > { %v2908_v22 = vpop.f32.mrf.mxu2 }
 0x181   : > { %1795 = vrot.lane.b32.xlu1 %v2703_v40, %s2267_s5  ;;  %v937_v21 = vpop.f32.mrf.mxu3  ;;  %v2912_v62 = vpop.f32.mrf.mxu0 }
 0x182   : > { %1875 = vrot.lane.b32.xlu0 %v2772_v28, %s2269_s8  ;;  %v2916_v43 = vpop.f32.mrf.mxu1 }
 0x183   : > { %v1355_v36 = vpop.permute.xlu1 %1354  ;;  %1873 = vrot.lane.b32.xlu2 %v2768_v9, %s2269_s8 }
 0x184   : > { %v1367_v37 = vsel %vm1366_vm11, %v1353_v53, %v1355_v36  ;;  %v1368_v54 = vsel %vm1366_vm11, %v1355_v36, %v2798_v0  ;;  %v1397_v40 = vpop.permute.xlu0 %1396 }
 0x185   : > { %v1379_v27 = vadd.f32 %v1367_v37, %v1339_v32  ;;  %v1380_v14 = vadd.f32 %v1368_v54, %v1340_v42  ;;  %v1408_v51 = vsel %vm1406_vm12, %v2833_v10, %v1397_v40  ;;  %v2925_v56 = vpop.permute.xlu2 %1514 }
 0x187   : > { %v1420_v28 = vadd.f32 %v1408_v51, %v1380_v14 }
 0x188   : > { %v2927_v8 = vpop.f32.mrf.mxu2 }
 0x189   : > { %1833 = vrot.lane.b32.xlu1 %v2731_v50, %s2268_s6  ;;  %v938_v9 = vpop.f32.mrf.mxu3  ;;  %v2931_v5 = vpop.f32.mrf.mxu0 }
 0x18a   : > { %1913 = vrot.lane.b32.xlu0 %v2815_v30, %s2270_s9  ;;  %v2935_v0 = vpop.f32.mrf.mxu1 }
 0x18b   : > { %v1393_v44 = vpop.permute.xlu1 %1392  ;;  %1911 = vrot.lane.b32.xlu2 %v2782_v17, %s2270_s9 }
 0x18c   : > { %v1407_v6 = vsel %vm1406_vm12, %v1393_v44, %v2833_v10  ;;  %v1435_v7 = vpop.permute.xlu0 %1434  ;;  %2149 = vmatmul.msk.bf16.gmra.mxu0 %vm3395_vm1, %v2472_v46  ;;  %2162 = vmatmul.msk.bf16.gmra.mxu1 %vm3395_vm1, %v2472_v46 }
 0x18d   : > { %v1419_v50 = vadd.f32 %v1407_v6, %v1379_v27  ;;  %v1447_v30 = vsel %vm1446_vm13, %v2856_v52, %v1435_v7  ;;  %v2947_v32 = vpop.permute.xlu2 %1552  ;;  %2175 = vmatmul.msk.bf16.gmra.mxu2 %vm3395_vm1, %v2472_v46 }
 0x18e   : > { %2188 = vmatmul.msk.bf16.gmra.mxu3 %vm3395_vm1, %v2472_v46 }
 0x18f   : > { %v1459_v17 = vadd.f32 %v1447_v30, %v1419_v50 }
 0x190   : > { %v871_v10 = vpop.f32.mrf.mxu2 }
 0x191   : > { %1871 = vrot.lane.b32.xlu1 %v2742_v25, %s2269_s8  ;;  %v940_v24 = vpop.f32.mrf.mxu3  ;;  %v2955_v61 = vpop.f32.mrf.mxu0 }
 0x192   : > { %1004 = vrot.lane.b32.xlu0 %v2878_v26, %s2247_s23  ;;  %v2959_v52 = vpop.f32.mrf.mxu1 }
 0x193   : > { %v2961_v29 = vpop.permute.xlu1 %1398  ;;  %1000 = vrot.lane.b32.xlu2 %v2864_v15, %s2247_s23 }
 0x194   : > { %v1409_v46 = vsel %vm1406_vm12, %v1397_v40, %v2961_v29  ;;  %v1473_v53 = vpop.permute.xlu0 %1472 }
 0x195   : > { %v1421_v4 = vadd.f32 %v1409_v46, %v1381_v58  ;;  %v2967_v39 = vpop.permute.xlu2 %1558 }
 0x198   : > { %v2969_v25 = vpop.f32.mrf.mxu2 }
 0x199   : > { %1915 = vrot.lane.b32.xlu1 %v2819_v41, %s2270_s9  ;;  %v941_v26 = vpop.f32.mrf.mxu3  ;;  %v2973_v35 = vpop.f32.mrf.mxu0 }
 0x19a   : > { %1042 = vrot.lane.b32.xlu0 %v2886_v34, %s2248_s26  ;;  %v2977_v15 = vpop.f32.mrf.mxu1 }
 0x19b   : > { %v1437_v59 = vpop.permute.xlu1 %1436  ;;  %1002 = vrot.lane.b32.xlu2 %v2868_v45, %s2247_s23 }
 0x19c   : > { %v1448_v38 = vsel %vm1446_vm13, %v1435_v7, %v1437_v59  ;;  %v1449_v42 = vsel %vm1446_vm13, %v1437_v59, %v2876_v13  ;;  %v2984_v20 = vpop.permute.xlu0 %1478  ;;  %2150 = vmatmul.msk.bf16.gmra.mxu0 %vm3395_vm1, %v2491_v55  ;;  %2163 = vmatmul.msk.bf16.gmra.mxu1 %vm3395_vm1, %v2491_v55 }
 0x19d   : > { %v1460_v41 = vadd.f32 %v1448_v38, %v1420_v28  ;;  %v1461_v34 = vadd.f32 %v1449_v42, %v1421_v4  ;;  %v1489_v63 = vsel %vm3393_vm14, %v2902_v57, %v2984_v20  ;;  %v2993_v45 = vpop.permute.xlu2 %1596  ;;  %2176 = vmatmul.msk.bf16.gmra.mxu2 %vm3395_vm1, %v2491_v55 }
 0x19e   : > { %2189 = vmatmul.msk.bf16.gmra.mxu3 %vm3395_vm1, %v2491_v55 }
 0x19f   : > { %v1501_v58 = vadd.f32 %v1489_v63, %v1461_v34 }
 0x1a0   : > { %v2999_v21 = vpop.f32.mrf.mxu2 }
 0x1a1   : > { %1044 = vrot.lane.b32.xlu1 %v2908_v22, %s2248_s26  ;;  %v943_v36 = vpop.f32.mrf.mxu3  ;;  %v3003_v37 = vpop.f32.mrf.mxu0 }
 0x1a2   : > { %1080 = vrot.lane.b32.xlu0 %v2912_v62, %s2249_s27  ;;  %v3007_v54 = vpop.f32.mrf.mxu1 }
 0x1a3   : > { %v1475_v40 = vpop.permute.xlu1 %1474  ;;  %1040 = vrot.lane.b32.xlu2 %v2882_v12, %s2248_s26 }
 0x1a4   : > { %v1487_v55 = vsel %vm3393_vm14, %v1473_v53, %v1475_v40  ;;  %v1488_v27 = vsel %vm3393_vm14, %v1475_v40, %v2902_v57  ;;  %v1517_v14 = vpop.permute.xlu0 %1516  ;;  %vm3396_vm14 = vcmask 39936  }
 0x1a5   : > { %v1499_v22 = vadd.f32 %v1487_v55, %v1459_v17  ;;  %v1500_v51 = vadd.f32 %v1488_v27, %v1460_v41  ;;  %v1528_v28 = vsel %vm1526_vm15, %v2925_v56, %v1517_v14  ;;  %v3016_v9 = vpop.permute.xlu2 %1634 }
 0x1a7   : > { %v1540_v62 = vadd.f32 %v1528_v28, %v1500_v51 }
 0x1a8   : > { %v878_v44 = vpop.f32.mrf.mxu2 }
 0x1a9   : > { %1082 = vrot.lane.b32.xlu1 %v2916_v43, %s2249_s27  ;;  %v944_v6 = vpop.f32.mrf.mxu3  ;;  %v3020_v12 = vpop.f32.mrf.mxu0 }
 0x1aa   : > { %1124 = vrot.lane.b32.xlu0 %v871_v10, %s2250_s30  ;;  %v800_v57 = vpop.f32.mrf.mxu1 }
 0x1ab   : > { %v1513_v7 = vpop.permute.xlu1 %1512  ;;  %1084 = vrot.lane.b32.xlu2 %v2927_v8, %s2249_s27  ;;  %s2038_s27 = sshll.u32 %s3431_s17, 3 }
 0x1ac   : > { %v1527_v50 = vsel %vm1526_vm15, %v1513_v7, %v2925_v56  ;;  %v1555_v30 = vpop.permute.xlu0 %1554  ;;  %2164 = vmatmul.msk.bf16.gmra.mxu1 %vm3395_vm1, %v2510_v2  ;;  %2151 = vmatmul.msk.bf16.gmra.mxu0 %vm3395_vm1, %v2510_v2 }
 0x1ad   : > { %v1539_v43 = vadd.f32 %v1527_v50, %v1499_v22  ;;  %v1567_v17 = vsel %vm3394_vm0, %v2947_v32, %v1555_v30  ;;  %v1672_v10 = vpop.permute.xlu2 %1671  ;;  %2177 = vmatmul.msk.bf16.gmra.mxu2 %vm3395_vm1, %v2510_v2 }
 0x1ae   : > { %2190 = vmatmul.msk.bf16.gmra.mxu3 %vm3395_vm1, %v2510_v2 }
 0x1af   : > { %v1579_v8 = vadd.f32 %v1567_v17, %v1539_v43 }
 0x1b0   : > { %v881_v56 = vpop.f32.mrf.mxu2 }
 0x1b1   : > { %1120 = vrot.lane.b32.xlu1 %v2931_v5, %s2250_s30  ;;  %v946_v24 = vpop.f32.mrf.mxu3  ;;  %v729_v46 = vpop.f32.mrf.mxu0 }
 0x1b2   : > { %1162 = vrot.lane.b32.xlu0 %v2959_v52, %s2251_s7  ;;  %v3041_v53 = vpop.f32.mrf.mxu1 }
 0x1b3   : > { %v3043_v32 = vpop.permute.xlu1 %1518  ;;  %1122 = vrot.lane.b32.xlu2 %v2935_v0, %s2250_s30 }
 0x1b4   : > { %v1529_v2 = vsel %vm1526_vm15, %v1517_v14, %v3043_v32  ;;  %v1593_v4 = vpop.permute.xlu0 %1592 }
 0x1b5   : > { %v1541_v26 = vadd.f32 %v1529_v2, %v1501_v58  ;;  %v3049_v59 = vpop.permute.xlu2 %1677 }
 0x1b8   : > { %v3051_v5 = vpop.f32.mrf.mxu2 }
 0x1b9   : > { %1164 = vrot.lane.b32.xlu1 %v2969_v25, %s2251_s7  ;;  %v947_v52 = vpop.f32.mrf.mxu3  ;;  %v3055_v38 = vpop.f32.mrf.mxu0 }
 0x1ba   : > { %1200 = vrot.lane.b32.xlu0 %v2973_v35, %s2252_s10  ;;  %v3059_v0 = vpop.f32.mrf.mxu1 }
 0x1bb   : > { %v1557_v42 = vpop.permute.xlu1 %1556  ;;  %1160 = vrot.lane.b32.xlu2 %v2955_v61, %s2251_s7 }
 0x1bc   : > { %v1568_v41 = vsel %vm3394_vm0, %v1555_v30, %v1557_v42  ;;  %v1569_v34 = vsel %vm3394_vm0, %v1557_v42, %v2967_v39  ;;  %v3066_v63 = vpop.permute.xlu0 %1598  ;;  %vm3397_vm0 = vcmask 23552  }
 0x1bd   : > { %v1580_v25 = vadd.f32 %v1568_v41, %v1540_v62  ;;  %v1581_v58 = vadd.f32 %v1569_v34, %v1541_v26  ;;  %v1609_v35 = vsel %vm3396_vm14, %v2993_v45, %v3066_v63  ;;  %v3071_v36 = vpop.permute.xlu2 %1715 }
 0x1bf   : > { %v1621_v40 = vadd.f32 %v1609_v35, %v1581_v58 }
 0x1c0   : > { %v886_v55 = vpop.f32.mrf.mxu2 }
 0x1c1   : > { %1202 = vrot.lane.b32.xlu1 %v2977_v15, %s2252_s10  ;;  %v949_v61 = vpop.f32.mrf.mxu3  ;;  %v3075_v27 = vpop.f32.mrf.mxu0 }
 0x1c2   : > { %1244 = vrot.lane.b32.xlu0 %v878_v44, %s2253_s11  ;;  %v807_v14 = vpop.f32.mrf.mxu1 }
 0x1c3   : > { %v1595_v22 = vpop.permute.xlu1 %1594  ;;  %1204 = vrot.lane.b32.xlu2 %v2999_v21, %s2252_s10  ;;  %s255_s10 = scalar_lea.vmem %s3392_s4, %s2038_s27 }
 0x1c4   : > { %v1607_v51 = vsel %vm3396_vm14, %v1593_v4, %v1595_v22  ;;  %v1608_v28 = vsel %vm3396_vm14, %v1595_v22, %v2993_v45  ;;  %v1637_v62 = vpop.permute.xlu0 %1636  ;;  %vm3399_vm14 = vcmask 867328  }
 0x1c5   : > { %v1619_v6 = vadd.f32 %v1607_v51, %v1579_v8  ;;  %v1620_v7 = vadd.f32 %v1608_v28, %v1580_v25  ;;  %v1647_v15 = vsel %vm3395_vm1, %v3016_v9, %v1637_v62  ;;  %v3085_v50 = vpop.permute.xlu2 %1753 }
 0x1c7   : > { %v1659_v30 = vadd.f32 %v1647_v15, %v1620_v7 }
 0x1c8   : > { %v888_v44 = vpop.f32.mrf.mxu2 }
 0x1c9   : > { %1240 = vrot.lane.b32.xlu1 %v3003_v37, %s2253_s11  ;;  %v950_v43 = vpop.f32.mrf.mxu3  ;;  %v737_v21 = vpop.f32.mrf.mxu0 }
 0x1ca   : > { %1282 = vrot.lane.b32.xlu0 %v800_v57, %s2254_s12  ;;  %v3090_v17 = vpop.f32.mrf.mxu1 }
 0x1cb   : > { %v1633_v45 = vpop.permute.xlu1 %1632  ;;  %1242 = vrot.lane.b32.xlu2 %v3007_v54, %s2253_s11 }
 0x1cc   : > { %v1646_v8 = vsel %vm3395_vm1, %v1633_v45, %v3016_v9  ;;  %v1674_v24 = vpop.permute.xlu0 %1673 }
 0x1cd   : > { %v1658_v2 = vadd.f32 %v1646_v8, %v1619_v6  ;;  %v1686_v4 = vsel %vm3397_vm0, %v1672_v10, %v1674_v24  ;;  %v1792_v26 = vpop.permute.xlu2 %1791 }
 0x1cf   : > { %v1698_v37 = vadd.f32 %v1686_v4, %v1658_v2 }
 0x1d0   : > { %v3097_v52 = vpop.f32.mrf.mxu2 }
 0x1d1   : > { %1284 = vrot.lane.b32.xlu1 %v881_v56, %s2254_s12  ;;  %v952_v57 = vpop.f32.mrf.mxu3  ;;  %v3100_v42 = vpop.f32.mrf.mxu0 }
 0x1d2   : > { %1320 = vrot.lane.b32.xlu0 %v729_v46, %s2255_s13  ;;  %v3103_v41 = vpop.f32.mrf.mxu1 }
 0x1d3   : > { %v3105_v54 = vpop.permute.xlu1 %1638  ;;  %1280 = vrot.lane.b32.xlu2 %v3020_v12, %s2254_s12 }
 0x1d4   : > { %v1648_v9 = vsel %vm3395_vm1, %v1637_v62, %v3105_v54  ;;  %v1712_v10 = vpop.permute.xlu0 %1711  ;;  %vm3400_vm1 = vcmask 900096  }
 0x1d5   : > { %v1660_v34 = vadd.f32 %v1648_v9, %v1621_v40  ;;  %v3111_v25 = vpop.permute.xlu2 %1835 }
 0x1d8   : > { %v893_v56 = vpop.f32.mrf.mxu2 }
 0x1d9   : > { %1322 = vrot.lane.b32.xlu1 %v3041_v53, %s2255_s13  ;;  %v953_v58 = vpop.f32.mrf.mxu3  ;;  %v3116_v35 = vpop.f32.mrf.mxu0 }
 0x1da   : > { %1364 = vrot.lane.b32.xlu0 %v886_v55, %s2256_s14  ;;  %v815_v46 = vpop.f32.mrf.mxu1 }
 0x1db   : > { %v1676_v61 = vpop.permute.xlu1 %1675  ;;  %1324 = vrot.lane.b32.xlu2 %v3051_v5, %s2255_s13 }
 0x1dc   : > { %v1687_v12 = vsel %vm3397_vm0, %v1674_v24, %v1676_v61  ;;  %v1688_v40 = vsel %vm3397_vm0, %v1676_v61, %v3049_v59  ;;  %v3123_v22 = vpop.permute.xlu0 %1755  ;;  %vm3398_vm0 = vcmask 883712  }
 0x1dd   : > { %v1699_v51 = vadd.f32 %v1687_v12, %v1659_v30  ;;  %v3125_v28 = vadd.f32 %v1688_v40, %v1660_v34  ;;  %v3127_v53 = vpop.permute.xlu2 %1873  ;;  %v1767_v24 = vsel %vm3398_vm0, %v3085_v50, %v3123_v22 }
 0x1e0   : > { %v3129_v55 = vpop.f32.mrf.mxu2 }
 0x1e1   : > { %1360 = vrot.lane.b32.xlu1 %v3055_v38, %s2256_s14  ;;  %v955_v62 = vpop.f32.mrf.mxu3  ;;  %v744_v43 = vpop.f32.mrf.mxu0 }
 0x1e2   : > { %1402 = vrot.lane.b32.xlu0 %v807_v14, %s2257_s16  ;;  %v3134_v5 = vpop.f32.mrf.mxu1 }
 0x1e3   : > { %v1714_v6 = vpop.permute.xlu1 %1713  ;;  %1362 = vrot.lane.b32.xlu2 %v3059_v0, %s2256_s14 }
 0x1e4   : > { %v1726_v7 = vsel %vm3400_vm1, %v1712_v10, %v1714_v6  ;;  %v1727_v15 = vsel %vm3400_vm1, %v1714_v6, %v3071_v36  ;;  %v1794_v30 = vpop.permute.xlu0 %1793  ;;  %vm1885_vm1 = vcmask 490496  }
 0x1e5   : > { %v1738_v38 = vadd.f32 %v1726_v7, %v1698_v37  ;;  %v1739_v45 = vadd.f32 %v1727_v15, %v1699_v51  ;;  %v1806_v8 = vsel %vm3399_vm14, %v1792_v26, %v1794_v30  ;;  %v1912_v14 = vpop.permute.xlu2 %1911 }
 0x1e7   : > { %v1779_v2 = vadd.f32 %v1767_v24, %v1739_v45 }
 0x1e8   : > { %v3145_v4 = vpop.f32.mrf.mxu2 }
 0x1e9   : > { %1404 = vrot.lane.b32.xlu1 %v888_v44, %s2257_s16  ;;  %v956_v0 = vpop.f32.mrf.mxu3  ;;  %v3155_v58 = vpop.f32.mrf.mxu0 }
 0x1ea   : > { %1440 = vrot.lane.b32.xlu0 %v737_v21, %s2258_s18  ;;  %v3149_v57 = vpop.f32.mrf.mxu1 }
 0x1eb   : > { %v1752_v9 = vpop.permute.xlu1 %1751  ;;  %1400 = vrot.lane.b32.xlu2 %v3075_v27, %s2257_s16 }
 0x1ec   : > { %v1766_v26 = vsel %vm3398_vm0, %v1752_v9, %v3085_v50  ;;  %v1832_v37 = vpop.permute.xlu0 %1831  ;;  %vm1845_vm0 = vcmask 523264  }
 0x1ed   : > { %v1778_v10 = vadd.f32 %v1766_v26, %v1738_v38  ;;  %v1001_v34 = vpop.permute.xlu2 %1000 }
 0x1ef   : > { %v1818_v61 = vadd.f32 %v1806_v8, %v1778_v10 }
 0x1f0   : > { %v901_v12 = vpop.f32.mrf.mxu2 }
 0x1f1   : > { %1442 = vrot.lane.b32.xlu1 %v3090_v17, %s2258_s18  ;;  %v958_v44 = vpop.f32.mrf.mxu3  ;;  %v3171_v17 = vpop.f32.mrf.mxu0 }
 0x1f2   : > { %1484 = vrot.lane.b32.xlu0 %v893_v56, %s2259_s19  ;;  %v822_v27 = vpop.f32.mrf.mxu1 }
 0x1f3   : > { %v3160_v21 = vpop.permute.xlu1 %1795  ;;  %1444 = vrot.lane.b32.xlu2 %v3097_v52, %s2258_s18  ;;  %v1010_v52 = vsel %vm1006_vm2, %v2612_v60, %v1001_v34 }
 0x1f4   : > { %v1807_v50 = vsel %vm3399_vm14, %v1794_v30, %v3160_v21  ;;  %v3166_v40 = vpop.permute.xlu0 %1875  ;;  %vm1925_vm14 = vcmask 457728   ;;  %v1022_v8 = vadd.f32 %v1010_v52, %v2446_v31 }
 0x1f5   : > { %v1819_v51 = vadd.f32 %v1807_v50, %v1779_v2  ;;  %v1003_v62 = vpop.permute.xlu2 %1002  ;;  %v1887_v0 = vsel %vm1885_vm1, %v3127_v53, %v3166_v40 }
 0x1f6   : > { %v1011_v6 = vsel %vm1006_vm2, %v1001_v34, %v1003_v62 }
 0x1f8   : > { %v3169_v7 = vpop.f32.mrf.mxu2 }
 0x1f9   : > { %1480 = vrot.lane.b32.xlu1 %v3100_v42, %s2259_s19  ;;  %v959_v56 = vpop.f32.mrf.mxu3  ;;  %v752_v31 = vpop.f32.mrf.mxu0 }
 0x1fa   : > { %1522 = vrot.lane.b32.xlu0 %v815_v46, %s2260_s20  ;;  %v3180_v30 = vpop.f32.mrf.mxu1 }
 0x1fb   : > { %v1834_v15 = vpop.permute.xlu1 %1833  ;;  %1482 = vrot.lane.b32.xlu2 %v3103_v41, %s2259_s19 }
 0x1fc   : > { %v1846_v38 = vsel %vm1845_vm0, %v1832_v37, %v1834_v15  ;;  %v1847_v42 = vsel %vm1845_vm0, %v1834_v15, %v3111_v25  ;;  %v1914_v45 = vpop.permute.xlu0 %1913 }
 0x1fd   : > { %v1858_v24 = vadd.f32 %v1846_v38, %v1818_v61  ;;  %v1859_v60 = vadd.f32 %v1847_v42, %v1819_v51  ;;  %v1926_v46 = vsel %vm1925_vm14, %v1912_v14, %v1914_v45  ;;  %v1041_v2 = vpop.permute.xlu2 %1040 }
 0x1fe   : > { %v1050_v41 = vsel %vm1046_vm3, %v2653_v11, %v1041_v2 }
 0x1ff   : > { %v1062_v9 = vadd.f32 %v1050_v41, %v1022_v8  ;;  %v1899_v26 = vadd.f32 %v1887_v0, %v1859_v60 }
 0x200   : > { %v906_v37 = vpop.f32.mrf.mxu2 }
 0x201   : > { %1524 = vrot.lane.b32.xlu1 %v3129_v55, %s2260_s20  ;;  %v961_v10 = vpop.f32.mrf.mxu3  ;;  %v754_v52 = vpop.f32.mrf.mxu0 }
 0x202   : > { %1560 = vrot.lane.b32.xlu0 %v744_v43, %s2261_s21  ;;  %v827_v51 = vpop.f32.mrf.mxu1 }
 0x203   : > { %v1872_v34 = vpop.permute.xlu1 %1871  ;;  %1520 = vrot.lane.b32.xlu2 %v3116_v35, %s2260_s20  ;;  %v1023_v35 = vadd.f32 %v1011_v6, %v2840_v19 }
 0x204   : > { %v1886_v14 = vsel %vm1885_vm1, %v1872_v34, %v3127_v53  ;;  %v1005_v61 = vpop.permute.xlu0 %1004 }
 0x205   : > { %v1898_v44 = vadd.f32 %v1886_v14, %v1858_v24  ;;  %v1012_v11 = vsel %vm1006_vm2, %v1003_v62, %v1005_v61  ;;  %v1085_v50 = vpop.permute.xlu2 %1084  ;;  %vm3401_vm2 = vcmask 220160  }
 0x206   : > { %v1024_v19 = vadd.f32 %v1012_v11, %v2844_v1 }
 0x207   : > { %v3200_v56 = vadd.f32 %v1926_v46, %v1898_v44 }
 0x208   : > { %v908_v55 = vpop.f32.mrf.mxu2 }
 0x209   : > { %1562 = vrot.lane.b32.xlu1 %v3134_v5, %s2261_s21 }
 0x20a   : > { %1604 = vrot.lane.b32.xlu0 %v901_v12, %s2262_s22  ;;  %v3215_v42 = vpop.f32.mrf.mxu1 }
 0x20b   : > { %v3205_v43 = vpop.permute.xlu1 %1915  ;;  %1564 = vrot.lane.b32.xlu2 %v3145_v4, %s2261_s21 }
 0x20c   : > { %v1927_v53 = vsel %vm1925_vm14, %v1914_v45, %v3205_v43  ;;  %v1043_v62 = vpop.permute.xlu0 %1042 }
 0x20d   : > { %v3212_v15 = vadd.f32 %v1927_v53, %v1899_v26  ;;  %v1051_v38 = vsel %vm1046_vm3, %v1041_v2, %v1043_v62  ;;  %v1123_v5 = vpop.permute.xlu2 %1122  ;;  %v757_v2 = vpop.f32.mrf.mxu0 }
 0x20e   : > { %v1063_v12 = vadd.f32 %v1051_v38, %v1023_v35 }
 0x210   : > { %v911_v6 = vpop.f32.mrf.mxu2 }
 0x211   : > { %1600 = vrot.lane.b32.xlu1 %v3155_v58, %s2262_s22 }
 0x212   : > { %1642 = vrot.lane.b32.xlu0 %v822_v27, %s2263_s24  ;;  %v3226_v58 = vpop.f32.mrf.mxu1 }
 0x213   : > { %v1045_v4 = vpop.permute.xlu1 %1044  ;;  %1602 = vrot.lane.b32.xlu2 %v3149_v57, %s2262_s22 }
 0x214   : > { %v1052_v45 = vsel %vm1046_vm3, %v1043_v62, %v1045_v4  ;;  %v1081_v8 = vpop.permute.xlu0 %1080  ;;  %vm3402_vm3 = vmmov %vm3401_vm2 }
 0x215   : > { %v1064_v24 = vadd.f32 %v1052_v45, %v1024_v19  ;;  %v1090_v60 = vsel %vm1086_vm4, %v2579_v48, %v1081_v8  ;;  %v1161_v46 = vpop.permute.xlu2 %1160 }
 0x216   : > { %v1102_v0 = vadd.f32 %v1090_v60, %v1062_v9 }
 0x218   : > { %v3236_v34 = vpop.f32.mrf.mxu2 }
 0x219   : > { %1644 = vrot.lane.b32.xlu1 %v3169_v7, %s2263_s24  ;;  %v759_v7 = vpop.f32.mrf.mxu0 }
 0x21a   : > { %1679 = vrot.lane.b32.xlu0 %v752_v31, %s2264_s25  ;;  %v3238_v61 = vpop.f32.mrf.mxu1 }
 0x21b   : > { %v1083_v1 = vpop.permute.xlu1 %1082  ;;  %1640 = vrot.lane.b32.xlu2 %v3171_v17, %s2263_s24  ;;  %v962_v17 = vpop.f32.mrf.mxu3 }
 0x21c   : > { %v1091_v57 = vsel %vm1086_vm4, %v1081_v8, %v1083_v1  ;;  %v1092_v27 = vsel %vm1086_vm4, %v1083_v1, %v1085_v50  ;;  %v1125_v41 = vpop.permute.xlu0 %1124  ;;  %vm3403_vm4 = vmmov %vm3401_vm2 }
 0x21d   : > { %v1103_v48 = vadd.f32 %v1091_v57, %v1063_v12  ;;  %v1104_v26 = vadd.f32 %v1092_v27, %v1064_v24  ;;  %v1132_v9 = vsel %vm1126_vm5, %v1123_v5, %v1125_v41  ;;  %v1205_v10 = vpop.permute.xlu2 %1204 }
 0x21f   : > { %v1144_v14 = vadd.f32 %v1132_v9, %v1104_v26 }
 0x220   : > { %v3248_v12 = vpop.f32.mrf.mxu2 }
 0x221   : > { %1681 = vrot.lane.b32.xlu1 %v3180_v30, %s2264_s25  ;;  %v1170_v30 = vsel %vm1166_vm6, %v2744_v33, %v1161_v46  ;;  %v762_v4 = vpop.f32.mrf.mxu0 }
 0x222   : > { %1717 = vrot.lane.b32.xlu0 %v754_v52, %s2265_s28 }
 0x223   : > { %v1121_v31 = vpop.permute.xlu1 %1120  ;;  %1683 = vrot.lane.b32.xlu2 %v906_v37, %s2264_s25  ;;  %v3253_v37 = vpop.f32.mrf.mxu1 }
 0x224   : > { %v1130_v44 = vsel %vm1126_vm5, %v2670_v18, %v1121_v31  ;;  %v1131_v11 = vsel %vm1126_vm5, %v1121_v31, %v1123_v5  ;;  %v1163_v50 = vpop.permute.xlu0 %1162  ;;  %v965_v5 = vpop.f32.mrf.mxu3  ;;  %vm3404_vm5 = vcmask 195584  }
 0x225   : > { %v1142_v35 = vadd.f32 %v1130_v44, %v1102_v0  ;;  %v1143_v53 = vadd.f32 %v1131_v11, %v1103_v48  ;;  %v1171_v62 = vsel %vm1166_vm6, %v1161_v46, %v1163_v50  ;;  %v1243_v38 = vpop.permute.xlu2 %1242 }
 0x227   : > { %v1183_v52 = vadd.f32 %v1171_v62, %v1143_v53  ;;  %v1182_v19 = vadd.f32 %v1170_v30, %v1142_v35 }
 0x228   : > { %v918_v0 = vpop.f32.mrf.mxu2 }
 0x229   : > { %1719 = vrot.lane.b32.xlu1 %v827_v51, %s2265_s28  ;;  %v764_v51 = vpop.f32.mrf.mxu0 }
 0x22a   : > { %1723 = vrot.lane.b32.xlu0 %v962_v17, %s2265_s28 }
 0x22b   : > { %v1165_v18 = vpop.permute.xlu1 %1164  ;;  %1721 = vrot.lane.b32.xlu2 %v908_v55, %s2265_s28  ;;  %v3261_v1 = vpop.f32.mrf.mxu1 }
 0x22c   : > { %v1172_v45 = vsel %vm1166_vm6, %v1163_v50, %v1165_v18  ;;  %v1201_v8 = vpop.permute.xlu0 %1200  ;;  %vm3405_vm6 = vmmov %vm3404_vm5 }
 0x22d   : > { %v1184_v24 = vadd.f32 %v1172_v45, %v1144_v14  ;;  %v1210_v33 = vsel %vm1206_vm8, %v2658_v23, %v1201_v8  ;;  %v1281_v60 = vpop.permute.xlu2 %1280 }
 0x22e   : > { %v1222_v46 = vadd.f32 %v1210_v33, %v1182_v19 }
 0x230   : > { %v3269_v17 = vpop.f32.mrf.mxu2 }
 0x231   : > { %1757 = vrot.lane.b32.xlu1 %v757_v2, %s2266_s29  ;;  %v967_v2 = vpop.f32.mrf.mxu3 }
 0x232   : > { %1761 = vrot.lane.b32.xlu0 %v911_v6, %s2266_s29  ;;  %v767_v6 = vpop.f32.mrf.mxu0 }
 0x233   : > { %v1203_v57 = vpop.permute.xlu1 %1202  ;;  %1759 = vrot.lane.b32.xlu2 %v3215_v42, %s2266_s29  ;;  %v842_v31 = vpop.f32.mrf.mxu1 }
 0x234   : > { %v1211_v55 = vsel %vm1206_vm8, %v1201_v8, %v1203_v57  ;;  %v1212_v27 = vsel %vm1206_vm8, %v1203_v57, %v1205_v10  ;;  %v1245_v41 = vpop.permute.xlu0 %1244  ;;  %vm3407_vm8 = vcmask 39936  }
 0x235   : > { %v1223_v23 = vadd.f32 %v1211_v55, %v1183_v52  ;;  %v1224_v48 = vadd.f32 %v1212_v27, %v1184_v24  ;;  %v1252_v26 = vsel %vm1246_vm7, %v1243_v38, %v1245_v41  ;;  %v1325_v9 = vpop.permute.xlu2 %1324  ;;  %v1290_v52 = vsel %vm1286_vm9, %v2870_v47, %v1281_v60 }
 0x237   : > { %v1264_v14 = vadd.f32 %v1252_v26, %v1224_v48 }
 0x238   : > { %v923_v18 = vpop.f32.mrf.mxu2 }
 0x239   : > { %1763 = vrot.lane.b32.xlu1 %v965_v5, %s2266_s29  ;;  %v970_v30 = vpop.f32.mrf.mxu3 }
 0x23a   : > { %1799 = vrot.lane.b32.xlu0 %v3226_v58, %s2267_s5 }
 0x23b   : > { %v1241_v42 = vpop.permute.xlu1 %1240  ;;  %1797 = vrot.lane.b32.xlu2 %v759_v7, %s2267_s5  ;;  %v769_v7 = vpop.f32.mrf.mxu0 }
 0x23c   : > { %v1250_v10 = vsel %vm1246_vm7, %v2789_v3, %v1241_v42  ;;  %v1251_v44 = vsel %vm1246_vm7, %v1241_v42, %v1243_v38  ;;  %v1283_v11 = vpop.permute.xlu0 %1282  ;;  %v2271_v38 = vmov 0   ;;  %vm3406_vm7 = vmmov %vm3404_vm5 }
 0x23d   : > { %v1262_v50 = vadd.f32 %v1250_v10, %v1222_v46  ;;  %v1263_v35 = vadd.f32 %v1251_v44, %v1223_v23  ;;  %v1291_v53 = vsel %vm1286_vm9, %v1281_v60, %v1283_v11  ;;  %v1363_v62 = vpop.permute.xlu2 %1362  ;;  %2238 = vset.pattern.permute.xlu0 %v2271_v38 }
 0x23f   : > { %v1303_v19 = vadd.f32 %v1291_v53, %v1263_v35  ;;  %v1302_v58 = vadd.f32 %v1290_v52, %v1262_v50 }
 0x241   : > { %1801 = vrot.lane.b32.xlu1 %v3236_v34, %s2267_s5  ;;  %v972_v60 = vpop.f32.mrf.mxu3 }
 0x242   : > { %1837 = vrot.lane.b32.xlu0 %v762_v4, %s2268_s6 }
 0x243   : > { %v1285_v3 = vpop.permute.xlu1 %1284  ;;  %1803 = vrot.lane.b32.xlu2 %v967_v2, %s2267_s5 }
 0x244   : > { %v1292_v5 = vsel %vm1286_vm9, %v1283_v11, %v1285_v3  ;;  %v1321_v45 = vpop.permute.xlu0 %1320  ;;  %vm3408_vm9 = vmmov %vm3407_vm8 }
 0x245   : > { %v1304_v8 = vadd.f32 %v1292_v5, %v1264_v14  ;;  %v1330_v47 = vsel %vm1326_vm10, %v2751_v49, %v1321_v45  ;;  %v1401_v24 = vpop.permute.xlu2 %1400 }
 0x246   : > { %v1342_v33 = vadd.f32 %v1330_v47, %v1302_v58 }
 0x249   : > { %1839 = vrot.lane.b32.xlu1 %v3238_v61, %s2268_s6  ;;  %v975_v48 = vpop.f32.mrf.mxu3 }
 0x24a   : > { %1843 = vrot.lane.b32.xlu0 %v970_v30, %s2268_s6 }
 0x24b   : > { %v1323_v34 = vpop.permute.xlu1 %1322  ;;  %1841 = vrot.lane.b32.xlu2 %v3248_v12, %s2268_s6 }
 0x24c   : > { %v1331_v4 = vsel %vm1326_vm10, %v1321_v45, %v1323_v34  ;;  %v1332_v46 = vsel %vm1326_vm10, %v1323_v34, %v1325_v9  ;;  %v1365_v57 = vpop.permute.xlu0 %1364  ;;  %vm3409_vm10 = vcmask 31744  }
 0x24d   : > { %v1343_v55 = vadd.f32 %v1331_v4, %v1303_v19  ;;  %v1344_v27 = vadd.f32 %v1332_v46, %v1304_v8  ;;  %v1372_v49 = vsel %vm1366_vm11, %v1363_v62, %v1365_v57  ;;  %v1445_v41 = vpop.permute.xlu2 %1444 }
 0x24f   : > { %v1384_v23 = vadd.f32 %v1372_v49, %v1344_v27 }
 0x251   : > { %1877 = vrot.lane.b32.xlu1 %v764_v51, %s2269_s8  ;;  %v1410_v51 = vsel %vm1406_vm12, %v2961_v29, %v1401_v24  ;;  %v977_v44 = vpop.f32.mrf.mxu3 }
 0x252   : > { %1881 = vrot.lane.b32.xlu0 %v918_v0, %s2269_s8 }
 0x253   : > { %v1361_v61 = vpop.permute.xlu1 %1360  ;;  %1879 = vrot.lane.b32.xlu2 %v3253_v37, %s2269_s8 }
 0x254   : > { %v1370_v12 = vsel %vm1366_vm11, %v2893_v16, %v1361_v61  ;;  %v1371_v26 = vsel %vm1366_vm11, %v1361_v61, %v1363_v62  ;;  %v1403_v9 = vpop.permute.xlu0 %1402  ;;  %v1944_v62 = vld [vmem:[%s3391_s3] sm:$0xff]  ;;  %vm3410_vm11 = vmmov %vm3409_vm10 }
 0x255   : > { %v1382_v2 = vadd.f32 %v1370_v12, %v1342_v33  ;;  %v1383_v14 = vadd.f32 %v1371_v26, %v1343_v55  ;;  %v1411_v31 = vsel %vm1406_vm12, %v1401_v24, %v1403_v9  ;;  %v1483_v42 = vpop.permute.xlu2 %1482 }
 0x257   : > { %v1423_v10 = vadd.f32 %v1411_v31, %v1383_v14  ;;  %v1422_v0 = vadd.f32 %v1410_v51, %v1382_v2 }
 0x259   : > { %1883 = vrot.lane.b32.xlu1 %v972_v60, %s2269_s8 }
 0x25a   : > { %1919 = vrot.lane.b32.xlu0 %v3261_v1, %s2270_s9 }
 0x25b   : > { %v1405_v16 = vpop.permute.xlu1 %1404  ;;  %1917 = vrot.lane.b32.xlu2 %v767_v6, %s2270_s9 }
 0x25c   : > { %v1412_v37 = vsel %vm1406_vm12, %v1403_v9, %v1405_v16  ;;  %v1441_v11 = vpop.permute.xlu0 %1440  ;;  %vm3411_vm12 = vmmov %vm3407_vm8 }
 0x25d   : > { %v1424_v50 = vadd.f32 %v1412_v37, %v1384_v23  ;;  %v1450_v35 = vsel %vm1446_vm13, %v2876_v13, %v1441_v11  ;;  %v1521_v53 = vpop.permute.xlu2 %1520 }
 0x25e   : > { %v1462_v29 = vadd.f32 %v1450_v35, %v1422_v0  ;;  %v1530_v24 = vsel %vm1526_vm15, %v3043_v32, %v1521_v53 }
 0x261   : > { %1921 = vrot.lane.b32.xlu1 %v3269_v17, %s2270_s9 }
 0x262   : > { %1947 = vperm.xlu0 %2238, %v1944_v62  }
 0x263   : > { %v1443_v1 = vpop.permute.xlu1 %1442  ;;  %1923 = vrot.lane.b32.xlu2 %v975_v48, %s2270_s9 }
 0x264   : > { %v1451_v6 = vsel %vm1446_vm13, %v1441_v11, %v1443_v1  ;;  %v1452_v30 = vsel %vm1446_vm13, %v1443_v1, %v1445_v41  ;;  %v1485_v52 = vpop.permute.xlu0 %1484  ;;  %vm3412_vm13 = vcmask 900096  }
 0x265   : > { %v1463_v19 = vadd.f32 %v1451_v6, %v1423_v10  ;;  %v1464_v13 = vadd.f32 %v1452_v30, %v1424_v50  ;;  %v1492_v58 = vsel %vm3401_vm2, %v1483_v42, %v1485_v52  ;;  %v1565_v18 = vpop.permute.xlu2 %1564  ;;  %vm3414_vm2 = vcmask 23552  }
 0x267   : > { %v1504_v7 = vadd.f32 %v1492_v58, %v1464_v13 }
 0x26b   : > { %v1481_v3 = vpop.permute.xlu1 %1480 }
 0x26c   : > { %v1490_v38 = vsel %vm3402_vm3, %v2984_v20, %v1481_v3  ;;  %v1491_v17 = vsel %vm3403_vm4, %v1481_v3, %v1483_v42  ;;  %v1523_v5 = vpop.permute.xlu0 %1522  ;;  %vm3415_vm3 = vcmask 883712   ;;  %vm3416_vm4 = vmmov %vm3414_vm2 }
 0x26d   : > { %v1502_v45 = vadd.f32 %v1490_v38, %v1462_v29  ;;  %v1503_v8 = vadd.f32 %v1491_v17, %v1463_v19  ;;  %v1531_v47 = vsel %vm1526_vm15, %v1521_v53, %v1523_v5  ;;  %v1603_v60 = vpop.permute.xlu2 %1602 }
 0x26f   : > { %v1543_v33 = vadd.f32 %v1531_v47, %v1503_v8  ;;  %v1542_v34 = vadd.f32 %v1530_v24, %v1502_v45 }
 0x273   : > { %v1525_v4 = vpop.permute.xlu1 %1524 }
 0x274   : > { %v1532_v46 = vsel %vm1526_vm15, %v1523_v5, %v1525_v4  ;;  %v1561_v57 = vpop.permute.xlu0 %1560  ;;  %vm3413_vm15 = vmmov %vm3409_vm10 }
 0x275   : > { %v1544_v55 = vadd.f32 %v1532_v46, %v1504_v7  ;;  %v1570_v20 = vsel %vm3404_vm5, %v2967_v39, %v1561_v57  ;;  %v1641_v49 = vpop.permute.xlu2 %1640  ;;  %vm3417_vm5 = vmmov %vm3414_vm2 }
 0x276   : > { %v1582_v27 = vadd.f32 %v1570_v20, %v1542_v34 }
 0x27b   : > { %v1563_v41 = vpop.permute.xlu1 %1562 }
 0x27c   : > { %v1571_v23 = vsel %vm3405_vm6, %v1561_v57, %v1563_v41  ;;  %v1572_v48 = vsel %vm3406_vm7, %v1563_v41, %v1565_v18  ;;  %v1605_v61 = vpop.permute.xlu0 %1604  ;;  %vm3418_vm6 = vmmov %vm3412_vm13 }
 0x27d   : > { %v1583_v32 = vadd.f32 %v1571_v23, %v1543_v33  ;;  %v1584_v12 = vadd.f32 %v1572_v48, %v1544_v55  ;;  %v1612_v26 = vsel %vm3407_vm8, %v1603_v60, %v1605_v61  ;;  %v1684_v2 = vpop.permute.xlu2 %1683  ;;  %v1649_v33 = vsel %vm3413_vm15, %v3105_v54, %v1641_v49  ;;  %vm3419_vm7 = vmmov %vm3418_vm6 }
 0x27e   : > { %vm3420_vm8 = vmmov %vm3418_vm6 }
 0x27f   : > { %v1624_v9 = vadd.f32 %v1612_v26, %v1584_v12 }
 0x283   : > { %v1601_v14 = vpop.permute.xlu1 %1600 }
 0x284   : > { %v1611_v31 = vsel %vm3408_vm9, %v1601_v14, %v1603_v60  ;;  %v1643_v42 = vpop.permute.xlu0 %1642  ;;  %v1610_v17 = vsel %vm3411_vm12, %v3066_v63, %v1601_v14  ;;  %vm3421_vm9 = vmmov %vm3415_vm3 }
 0x285   : > { %v1623_v51 = vadd.f32 %v1611_v31, %v1583_v32  ;;  %v1650_v39 = vsel %vm3409_vm10, %v1641_v49, %v1643_v42  ;;  %v1722_v37 = vpop.permute.xlu2 %1721  ;;  %v1622_v45 = vadd.f32 %v1610_v17, %v1582_v27  ;;  %vm3422_vm10 = vcmask 867328   ;;  %vm3424_vm12 = vmmov %vm3415_vm3 }
 0x286   : > { %vm3426_vm15 = vmmov %vm3422_vm10 }
 0x287   : > { %v1662_v10 = vadd.f32 %v1650_v39, %v1623_v51  ;;  %v1661_v4 = vadd.f32 %v1649_v33, %v1622_v45 }
 0x28b   : > { %v1645_v0 = vpop.permute.xlu1 %1644 }
 0x28c   : > { %v1651_v44 = vsel %vm3410_vm11, %v1643_v42, %v1645_v0  ;;  %v1680_v16 = vpop.permute.xlu0 %1679  ;;  %vm3423_vm11 = vmmov %vm3415_vm3 }
 0x28d   : > { %v1663_v11 = vadd.f32 %v1651_v44, %v1624_v9  ;;  %v1760_v53 = vpop.permute.xlu2 %1759  ;;  %v1689_v60 = vsel %vm3414_vm2, %v3049_v59, %v1680_v16  ;;  %vm3427_vm2 = vmmov %vm3422_vm10 }
 0x28e   : > { %v1701_v55 = vadd.f32 %v1689_v60, %v1661_v4 }
 0x293   : > { %v1682_v50 = vpop.permute.xlu1 %1681 }
 0x294   : > { %v1718_v35 = vpop.permute.xlu0 %1717  ;;  %v1690_v63 = vsel %vm3416_vm4, %v1680_v16, %v1682_v50  ;;  %v1691_v46 = vsel %vm3417_vm5, %v1682_v50, %v1684_v2 }
 0x295   : > { %v1798_v1 = vpop.permute.xlu2 %1797  ;;  %v1728_v8 = vsel %vm3412_vm13, %v3071_v36, %v1718_v35  ;;  %v1702_v49 = vadd.f32 %v1690_v63, %v1662_v10  ;;  %v1703_v59 = vadd.f32 %v1691_v46, %v1663_v11  ;;  %vm3425_vm13 = vmmov %vm3422_vm10 }
 0x296   : > { %v1740_v57 = vadd.f32 %v1728_v8, %v3125_v28  ;;  %v1808_v23 = vsel %vm3422_vm10, %v3160_v21, %v1798_v1 }
 0x29b   : > { %v1720_v29 = vpop.permute.xlu1 %1719 }
 0x29c   : > { %v1724_v62 = vpop.permute.xlu0 %1723  ;;  %v1729_v36 = vsel %vm3418_vm6, %v1718_v35, %v1720_v29  ;;  %v1730_v20 = vsel %vm3419_vm7, %v1720_v29, %v1722_v37 }
 0x29d   : > { %v1804_v52 = vpop.permute.xlu2 %1803  ;;  %v1731_v54 = vsel %vm3420_vm8, %v1722_v37, %v1724_v62  ;;  %v1741_v48 = vadd.f32 %v1729_v36, %v1701_v55  ;;  %v1742_v32 = vadd.f32 %v1730_v20, %v1702_v49 }
 0x29e   : > { %v1743_v12 = vadd.f32 %v1731_v54, %v1703_v59 }
 0x2a3   : > { %v1758_v6 = vpop.permute.xlu1 %1757 }
 0x2a4   : > { %v1762_v30 = vpop.permute.xlu0 %1761  ;;  %v1768_v34 = vsel %vm3415_vm3, %v3123_v22, %v1758_v6  ;;  %v1769_v41 = vsel %vm3421_vm9, %v1758_v6, %v1760_v53 }
 0x2a5   : > { %v1842_v7 = vpop.permute.xlu2 %1841  ;;  %v1780_v27 = vadd.f32 %v1768_v34, %v1740_v57  ;;  %v1770_v28 = vsel %vm3423_vm11, %v1760_v53, %v1762_v30  ;;  %v1781_v14 = vadd.f32 %v1769_v41, %v1741_v48 }
 0x2a6   : > { %v1782_v39 = vadd.f32 %v1770_v28, %v1742_v32 }
 0x2a7   : > { %v1820_v42 = vadd.f32 %v1808_v23, %v1780_v27 }
 0x2ab   : > { %v1764_v19 = vpop.permute.xlu1 %1763 }
 0x2ac   : > { %v1800_v13 = vpop.permute.xlu0 %1799  ;;  %v1771_v61 = vsel %vm3424_vm12, %v1762_v30, %v1764_v19 }
 0x2ad   : > { %v1880_v5 = vpop.permute.xlu2 %1879  ;;  %v1809_v26 = vsel %vm3425_vm13, %v1798_v1, %v1800_v13  ;;  %v1783_v10 = vadd.f32 %v1771_v61, %v1743_v12 }
 0x2ae   : > { %v1821_v16 = vadd.f32 %v1809_v26, %v1781_v14 }
 0x2b3   : > { %v1802_v58 = vpop.permute.xlu1 %1801 }
 0x2b4   : > { %v1838_v18 = vpop.permute.xlu0 %1837  ;;  %v1810_v31 = vsel %vm3426_vm15, %v1800_v13, %v1802_v58  ;;  %v1811_v21 = vsel %vm3427_vm2, %v1802_v58, %v1804_v52 }
 0x2b5   : > { %v1918_v22 = vpop.permute.xlu2 %1917  ;;  %v1848_v9 = vsel %vm1845_vm0, %v3111_v25, %v1838_v18  ;;  %v1822_v50 = vadd.f32 %v1810_v31, %v1782_v39  ;;  %v1823_v35 = vadd.f32 %v1811_v21, %v1783_v10 }
 0x2b6   : > { %v1860_v37 = vadd.f32 %v1848_v9, %v1820_v42  ;;  %v1928_v58 = vsel %vm1925_vm14, %v3205_v43, %v1918_v22 }
 0x2bb   : > { %v1840_v3 = vpop.permute.xlu1 %1839 }
 0x2bc   : > { %v1844_v38 = vpop.permute.xlu0 %1843  ;;  %v1849_v0 = vsel %vm1845_vm0, %v1838_v18, %v1840_v3  ;;  %v1850_v25 = vsel %vm1845_vm0, %v1840_v3, %v1842_v7 }
 0x2bd   : > { %v1851_v11 = vsel %vm1845_vm0, %v1842_v7, %v1844_v38  ;;  %v1861_v29 = vadd.f32 %v1849_v0, %v1821_v16  ;;  %v1862_v30 = vadd.f32 %v1850_v25, %v1822_v50  ;;  %v1924_v19 = vpop.permute.xlu2 %1923 }
 0x2c3   : > { %v1878_v47 = vpop.permute.xlu1 %1877 }
 0x2c4   : > { %v1882_v24 = vpop.permute.xlu0 %1881  ;;  %v1888_v44 = vsel %vm1885_vm1, %v3166_v40, %v1878_v47  ;;  %v1889_v53 = vsel %vm1885_vm1, %v1878_v47, %v1880_v5  ;;  %v1863_v40 = vadd.f32 %v1851_v11, %v1823_v35 }
 0x2c5   : > { %v1900_v62 = vadd.f32 %v1888_v44, %v1860_v37  ;;  %v1890_v1 = vsel %vm1885_vm1, %v1880_v5, %v1882_v24  ;;  %v1901_v13 = vadd.f32 %v1889_v53, %v1861_v29 }
 0x2c6   : > { %v1902_v18 = vadd.f32 %v1890_v1, %v1862_v30 }
 0x2c7   : > { %v1940_v38 = vadd.f32 %v1928_v58, %v1900_v62 }
 0x2cb   : > { %v1884_v2 = vpop.permute.xlu1 %1883 }
 0x2cc   : > { %v1920_v51 = vpop.permute.xlu0 %1919  ;;  %v1891_v6 = vsel %vm1885_vm1, %v1882_v24, %v1884_v2 }
 0x2cd   : > { %v1929_v52 = vsel %vm1925_vm14, %v1918_v22, %v1920_v51  ;;  %v1903_v7 = vadd.f32 %v1891_v6, %v1863_v40 }
 0x2ce   : > { %v1941_v17 = vadd.f32 %v1929_v52, %v1901_v13 }
 0x2d3   : > { %v1922_v3 = vpop.permute.xlu1 %1921 }
 0x2d4   : > { %v1930_v45 = vsel %vm1925_vm14, %v1920_v51, %v1922_v3  ;;  %v1931_v5 = vsel %vm1925_vm14, %v1922_v3, %v1924_v19  ;;  %v1948_v8 = vpop.permute.xlu0 %1947 }
 0x2d5   : > { %v1942_v47 = vadd.f32 %v1930_v45, %v1902_v18  ;;  %v1943_v24 = vadd.f32 %v1931_v5, %v1903_v7  ;;  %v1950_v33 = vadd.f32 %v1948_v8, %v3200_v56  ;;  %v1951_v43 = vadd.f32 %v1948_v8, %v3212_v15 }
 0x2d6   : > { %v1952_v60 = vadd.f32 %v1948_v8, %v1940_v38  ;;  %v1953_v34 = vadd.f32 %v1948_v8, %v1941_v17 }
 0x2d7   : > { %v1954_v4 = vadd.f32 %v1948_v8, %v1942_v47  ;;  %1956 = vst [vmem:[%s255_s10] sm:$0xff] %v1950_v33  ;;  %v1955_v63 = vadd.f32 %v1948_v8, %v1943_v24 }
 0x2d8   : > { %1957 = vst [vmem:[%s255_s10 + $0x8] sm:$0xff] %v1951_v43 }
 0x2d9   : > { %1958 = vst [vmem:[%s255_s10 + $0x10] sm:$0xff] %v1952_v60 }
 0x2da   : > { %1959 = vst [vmem:[%s255_s10 + $0x18] sm:$0xff] %v1953_v34 }
 0x2db   : > { %1960 = vst [vmem:[%s255_s10 + $0x20] sm:$0xff] %v1954_v4 }
 0x2dc   : > { %1961 = vst [vmem:[%s255_s10 + $0x28] sm:$0xff] %v1955_v63 }
 0x2dd PF: > { %s14_s15 = sadd.s32 1, %s2245_s15  }
 0x2de   : > { %p11_p6 = scmp.ge.s32.totalorder %s14_s15, 4  }
 0x2e0   :  { %13 = sbr.rel (!%p11_p6) target bundleno = 1 (0x1), region = 70 }

</bundles_post_ra>
